<compile_context>
chip_gen: v5e
topology: v5e:2x2
jax: 0.10.0
libtpu: 0.0.40
codegen_flags: <defaults>
</compile_context>

<pallas_src>
import functools

import jax
import jax.numpy as jnp
from jax import lax
from jax.experimental import pallas as pl
from jax.experimental.pallas import tpu as pltpu

LANE = 128      # vreg lane width (last dim)
SUBLANE = 8     # vreg sublane width (second-to-last dim)
# Conservative per-core VMEM budget: below v7x's 64 MiB/TC physical, above the
# 32 MiB default scoped limit on v6e/v7x.
VMEM_BUDGET_BYTES = 48 * 1024 * 1024


def _round_up(v, m):
    return (v + m - 1) // m * m


def mlp_kernel(x_ref, w1_ref, b1_ref, g_ref, beta_ref, w2_ref, b2_ref,
               mask_ref, o_ref, *, inv_h, eps, masked):
    # ---- Linear 1 on the MXU, f32 accumulation ----
    # Padded W1 columns / b1 lanes are zero, so h's padded lanes are already
    # exactly zero; no masking needed here.
    h = jnp.dot(x_ref[...], w1_ref[...], preferred_element_type=jnp.float32)
    h = h + b1_ref[...]

    # ---- LayerNorm over the TRUE hidden width (two-pass, f32) ----
    mean = jnp.sum(h, axis=-1, keepdims=True) * inv_h
    centered = h - mean
    if masked:
        # One VPU multiply with a resident mask, only where it matters (the
        # variance); padded lanes of hn are zeroed by gamma/beta anyway.
        cm = centered * mask_ref[...]
    else:
        cm = centered
    var = jnp.sum(cm * cm, axis=-1, keepdims=True) * inv_h
    # gamma/beta are zero in padded lanes -> padded lanes of hn are exactly 0.
    hn = centered * lax.rsqrt(var + eps) * g_ref[...] + beta_ref[...]

    # ---- ReLU ----
    hn = jnp.maximum(hn, 0.0)

    # ---- Linear 2 on the MXU, f32 accumulation ----
    out = jnp.dot(hn.astype(w2_ref.dtype), w2_ref[...],
                  preferred_element_type=jnp.float32)
    out = out + b2_ref[...]
    o_ref[...] = out.astype(o_ref.dtype)


def mlp_forward(x, w1, b1, gamma, beta, w2, b2, *, tile_n=512,
                compute_dtype=None, out_dtype=None, row_buffers=2, eps=1e-5):
    """x: (N, input_dim). w1: (input_dim, H), w2: (H, H); b1/b2/gamma/beta: (H,).

    Returns (N, H) in `out_dtype` (default x.dtype). compute_dtype=jnp.bfloat16
    casts the matmul operands to bf16 (f32 accumulation kept) -- a near-linear
    DMA win on all generations for this HBM-bound kernel; LayerNorm math stays
    f32. out_dtype=jnp.bfloat16 additionally halves output writeback traffic.
    """
    n, d = x.shape
    h = w1.shape[1]
    assert w1.shape == (d, h) and w2.shape == (h, h)
    assert b1.shape == (h,) and b2.shape == (h,)
    assert gamma.shape == (h,) and beta.shape == (h,)

    if out_dtype is None:
        out_dtype = x.dtype
    if compute_dtype is not None:
        x = x.astype(compute_dtype)
        w1 = w1.astype(compute_dtype)
        w2 = w2.astype(compute_dtype)

    # 2-D (1, H) f32 views of the per-feature params.
    b1 = b1.reshape(1, -1).astype(jnp.float32)
    b2 = b2.reshape(1, -1).astype(jnp.float32)
    gamma = gamma.reshape(1, -1).astype(jnp.float32)
    beta = beta.reshape(1, -1).astype(jnp.float32)

    # Lane-dense padding of the hidden dim to a multiple of 128. Zero padding
    # keeps the math exact (masked variance; zero gamma/beta/W2 rows).
    h_pad = _round_up(h, LANE)
    masked = h_pad != h
    if masked:
        pc = h_pad - h
        w1 = jnp.pad(w1, ((0, 0), (0, pc)))
        w2 = jnp.pad(w2, ((0, pc), (0, pc)))
        b1 = jnp.pad(b1, ((0, 0), (0, pc)))
        b2 = jnp.pad(b2, ((0, 0), (0, pc)))
        gamma = jnp.pad(gamma, ((0, 0), (0, pc)))
        beta = jnp.pad(beta, ((0, 0), (0, pc)))
    mask = (jnp.arange(h_pad) < h).astype(jnp.float32).reshape(1, -1)

    # Row tile: big enough to amortize per-grid-step overhead and feed the MXU
    # M>=256, but keep >=2 grid steps when N allows so both v7x TensorCores
    # get work under dimension_semantics=("parallel",).
    tile_n = max(SUBLANE, _round_up(min(tile_n, _round_up(n, SUBLANE)), SUBLANE))
    while tile_n > SUBLANE and pl.cdiv(n, tile_n) < 2:
        tile_n = max(SUBLANE, _round_up(tile_n // 2, SUBLANE))

    in_itemsize = jnp.dtype(x.dtype).itemsize
    out_itemsize = jnp.dtype(out_dtype).itemsize
    w_itemsize = jnp.dtype(w1.dtype).itemsize

    def vmem_estimate(t):
        weights = (d * h_pad + h_pad * h_pad) * w_itemsize      # W1 + W2
        params = 5 * h_pad * 4                                  # b1,b2,gamma,beta,mask
        tiles = 2 * t * d * in_itemsize + 2 * t * h_pad * out_itemsize
        interm = t * h_pad * 4                                  # f32 hidden activation
        return weights + params + tiles + interm

    # Explicit VMEM budget guard (v7x has only 64 MiB/TC): shrink the row tile
    # until the resident-weight design fits.
    while vmem_estimate(tile_n) > VMEM_BUDGET_BYTES and tile_n > SUBLANE:
        tile_n = max(SUBLANE, _round_up(tile_n // 2, SUBLANE))
    if vmem_estimate(tile_n) > VMEM_BUDGET_BYTES:
        # TODO(synk): for hidden sizes where W1/W2 alone exceed the v7x VMEM
        # budget, switch to a hidden/K-tiled grid instead of weight residency.
        raise ValueError("MLP weights do not fit the VMEM budget for the "
                         "resident-weight kernel; hidden_size too large.")

    n_pad = _round_up(n, tile_n)
    if n_pad != n:
        x = jnp.pad(x, ((0, n_pad - n), (0, 0)))
    grid = (n_pad // tile_n,)

    row_kwargs = {}
    if row_buffers > 2:
        row_kwargs = dict(pipeline_mode=pl.Buffered(row_buffers))
    row_in_spec = pl.BlockSpec((tile_n, d), lambda i: (i, 0), **row_kwargs)
    row_out_spec = pl.BlockSpec((tile_n, h_pad), lambda i: (i, 0), **row_kwargs)
    # Constant index_map -> DMA'd once, VMEM-resident across row tiles.
    rep_spec = lambda shape: pl.BlockSpec(shape, lambda i: (0, 0))

    vmem_limit = int(min(VMEM_BUDGET_BYTES,
                         max(32 * 1024 * 1024, 2 * vmem_estimate(tile_n))))

    kernel = functools.partial(mlp_kernel, inv_h=1.0 / float(h),
                               eps=float(eps), masked=masked)
    out = pl.pallas_call(
        kernel,
        out_shape=jax.ShapeDtypeStruct((n_pad, h_pad), out_dtype),
        grid=grid,
        in_specs=[
            row_in_spec,               # x row tile (pipelined)
            rep_spec(w1.shape),        # W1 (resident)
            rep_spec(b1.shape),        # b1
            rep_spec(gamma.shape),     # LN gamma
            rep_spec(beta.shape),      # LN beta
            rep_spec(w2.shape),        # W2 (resident)
            rep_spec(b2.shape),        # b2
            rep_spec(mask.shape),      # lane-validity mask (f32)
        ],
        out_specs=row_out_spec,
        compiler_params=pltpu.CompilerParams(
            dimension_semantics=("parallel",),
            vmem_limit_bytes=vmem_limit),
    )(x, w1, b1, gamma, beta, w2, b2, mask)
    return out[:n, :h]


def reference(x, w1, b1, gamma, beta, w2, b2, eps=1e-5):
    h = x @ w1 + b1
    mean = jnp.mean(h, axis=-1, keepdims=True)
    var = jnp.mean(jnp.square(h - mean), axis=-1, keepdims=True)
    hn = (h - mean) * lax.rsqrt(var + eps)
    hn = hn * gamma + beta
    hn = jnp.maximum(hn, 0.0)
    return hn @ w2 + b2


if __name__ == "__main__":
    # Hidden deliberately NOT a multiple of 128 (exercises lane padding);
    # N ragged (exercises row padding + >=2-grid-step tile selection).
    N, INPUT_DIM, HIDDEN = 500, 64, 96

    key = jax.random.PRNGKey(0)
    kx, kw1, kb1, kw2, kb2 = jax.random.split(key, 5)

    x = jax.random.normal(kx, (N, INPUT_DIM), dtype=jnp.float32)

    # Synthetic params mirroring nn.Linear shapes (stored transposed for x@W).
    bound1 = 1.0 / (INPUT_DIM ** 0.5)
    w1 = jax.random.uniform(kw1, (INPUT_DIM, HIDDEN), jnp.float32, -bound1, bound1)
    b1 = jax.random.uniform(kb1, (HIDDEN,), jnp.float32, -bound1, bound1)
    bound2 = 1.0 / (HIDDEN ** 0.5)
    w2 = jax.random.uniform(kw2, (HIDDEN, HIDDEN), jnp.float32, -bound2, bound2)
    b2 = jax.random.uniform(kb2, (HIDDEN,), jnp.float32, -bound2, bound2)
    # LayerNorm params: torch default init.
    gamma = jnp.ones((HIDDEN,), jnp.float32)
    beta = jnp.zeros((HIDDEN,), jnp.float32)

    ref = reference(x, w1, b1.reshape(1, -1), gamma.reshape(1, -1),
                    beta.reshape(1, -1), w2, b2.reshape(1, -1))

    # f32 path: exact match against the reference (auto tile_n -> 256, 2 steps).
    out = mlp_forward(x, w1, b1, gamma, beta, w2, b2)
    out = jax.block_until_ready(out)
    assert out.shape == (N, HIDDEN)
    assert jnp.allclose(out, ref, atol=1e-5, rtol=1e-5), "f32 mismatch vs reference"

    # bf16-matmul / f32-accumulate path (all generations): loose tolerance.
    out_bf16 = mlp_forward(x, w1, b1, gamma, beta, w2, b2,
                           compute_dtype=jnp.bfloat16)
    out_bf16 = jax.block_until_ready(out_bf16)
    assert jnp.allclose(out_bf16, ref, atol=1.5e-1, rtol=1.5e-1), \
        "bf16-compute mismatch vs reference"

    # bf16 output storage on top of bf16 compute (halves output HBM traffic).
    out_bf16o = mlp_forward(x, w1, b1, gamma, beta, w2, b2,
                            compute_dtype=jnp.bfloat16, out_dtype=jnp.bfloat16)
    out_bf16o = jax.block_until_ready(out_bf16o)
    assert out_bf16o.dtype == jnp.bfloat16
    assert jnp.allclose(out_bf16o.astype(jnp.float32), ref, atol=2e-1, rtol=2e-1), \
        "bf16-output mismatch vs reference"

    print("KERNEL_OK")
</pallas_src>

<mosaic_0001>
module attributes {stable_mosaic.version = 11 : i64} {
  func.func @mlp_kernel(%arg0: i32, %arg1: memref<256x64xf32, #tpu.memory_space<vmem>>, %arg2: memref<64x128xf32, #tpu.memory_space<vmem>>, %arg3: memref<1x128xf32, #tpu.memory_space<vmem>>, %arg4: memref<1x128xf32, #tpu.memory_space<vmem>>, %arg5: memref<1x128xf32, #tpu.memory_space<vmem>>, %arg6: memref<128x128xf32, #tpu.memory_space<vmem>>, %arg7: memref<1x128xf32, #tpu.memory_space<vmem>>, %arg8: memref<1x128xf32, #tpu.memory_space<vmem>>, %arg9: memref<256x128xf32, #tpu.memory_space<vmem>>) attributes {dimension_semantics = [#tpu.dimension_semantics<parallel>], iteration_bounds = array<i64: 2>, scalar_prefetch = 0 : i64, scratch_operands = 0 : i64, tpu.core_type = #tpu.core_type<tc>, window_params = [{transform_indices = @transform_0, window_bounds = array<i64: 256, 64>}, {pipeline_mode = #tpu.pipeline_mode<synchronous>, transform_indices = @transform_1, window_bounds = array<i64: 64, 128>}, {pipeline_mode = #tpu.pipeline_mode<synchronous>, transform_indices = @transform_2, window_bounds = array<i64: 1, 128>}, {pipeline_mode = #tpu.pipeline_mode<synchronous>, transform_indices = @transform_3, window_bounds = array<i64: 1, 128>}, {pipeline_mode = #tpu.pipeline_mode<synchronous>, transform_indices = @transform_4, window_bounds = array<i64: 1, 128>}, {pipeline_mode = #tpu.pipeline_mode<synchronous>, transform_indices = @transform_5, window_bounds = array<i64: 128, 128>}, {pipeline_mode = #tpu.pipeline_mode<synchronous>, transform_indices = @transform_6, window_bounds = array<i64: 1, 128>}, {pipeline_mode = #tpu.pipeline_mode<synchronous>, transform_indices = @transform_7, window_bounds = array<i64: 1, 128>}, {transform_indices = @transform_8, window_bounds = array<i64: 256, 128>}]} {
    %c0 = arith.constant 0 : index
    %c0_0 = arith.constant 0 : index
    %0 = vector.load %arg1[%c0, %c0_0] : memref<256x64xf32, #tpu.memory_space<vmem>>, vector<256x64xf32>
    %c0_1 = arith.constant 0 : index
    %c0_2 = arith.constant 0 : index
    %1 = vector.load %arg2[%c0_1, %c0_2] : memref<64x128xf32, #tpu.memory_space<vmem>>, vector<64x128xf32>
    %cst = arith.constant dense<0.000000e+00> : vector<256x128xf32>
    %2 = tpu.matmul %0, %1, %cst {dimension_numbers = #tpu.dot_dimension_numbers<[1], [0], [0], [1], [0, 0, 1, 1], [], []>} : vector<256x64xf32>, vector<64x128xf32>, vector<256x128xf32> -> vector<256x128xf32>
    %c0_3 = arith.constant 0 : index
    %c0_4 = arith.constant 0 : index
    %3 = vector.load %arg3[%c0_3, %c0_4] : memref<1x128xf32, #tpu.memory_space<vmem>>, vector<1x128xf32>
    %4 = vector.broadcast %3 : vector<1x128xf32> to vector<256x128xf32>
    %5 = arith.addf %2, %4 : vector<256x128xf32>
    %cst_5 = arith.constant dense<0.000000e+00> : vector<256xf32>
    %6 = vector.multi_reduction <add>, %5, %cst_5 [1] : vector<256x128xf32> to vector<256xf32>
    %7 = vector.shape_cast %6 : vector<256xf32> to vector<256x1xf32>
    %cst_6 = arith.constant 0.010416667 : f32
    %8 = vector.broadcast %cst_6 : f32 to vector<256x1xf32>
    %9 = arith.mulf %7, %8 : vector<256x1xf32>
    %10 = vector.broadcast %9 : vector<256x1xf32> to vector<256x128xf32>
    %11 = arith.subf %5, %10 : vector<256x128xf32>
    %c0_7 = arith.constant 0 : index
    %c0_8 = arith.constant 0 : index
    %12 = vector.load %arg8[%c0_7, %c0_8] : memref<1x128xf32, #tpu.memory_space<vmem>>, vector<1x128xf32>
    %13 = vector.broadcast %12 : vector<1x128xf32> to vector<256x128xf32>
    %14 = arith.mulf %11, %13 : vector<256x128xf32>
    %15 = arith.mulf %14, %14 : vector<256x128xf32>
    %cst_9 = arith.constant dense<0.000000e+00> : vector<256xf32>
    %16 = vector.multi_reduction <add>, %15, %cst_9 [1] : vector<256x128xf32> to vector<256xf32>
    %17 = vector.shape_cast %16 : vector<256xf32> to vector<256x1xf32>
    %cst_10 = arith.constant 0.010416667 : f32
    %18 = vector.broadcast %cst_10 : f32 to vector<256x1xf32>
    %19 = arith.mulf %17, %18 : vector<256x1xf32>
    %cst_11 = arith.constant 9.99999974E-6 : f32
    %20 = vector.broadcast %cst_11 : f32 to vector<256x1xf32>
    %21 = arith.addf %19, %20 : vector<256x1xf32>
    %22 = math.rsqrt %21 : vector<256x1xf32>
    %23 = vector.broadcast %22 : vector<256x1xf32> to vector<256x128xf32>
    %24 = arith.mulf %11, %23 : vector<256x128xf32>
    %c0_12 = arith.constant 0 : index
    %c0_13 = arith.constant 0 : index
    %25 = vector.load %arg4[%c0_12, %c0_13] : memref<1x128xf32, #tpu.memory_space<vmem>>, vector<1x128xf32>
    %26 = vector.broadcast %25 : vector<1x128xf32> to vector<256x128xf32>
    %27 = arith.mulf %24, %26 : vector<256x128xf32>
    %c0_14 = arith.constant 0 : index
    %c0_15 = arith.constant 0 : index
    %28 = vector.load %arg5[%c0_14, %c0_15] : memref<1x128xf32, #tpu.memory_space<vmem>>, vector<1x128xf32>
    %29 = vector.broadcast %28 : vector<1x128xf32> to vector<256x128xf32>
    %30 = arith.addf %27, %29 : vector<256x128xf32>
    %cst_16 = arith.constant 0.000000e+00 : f32
    %31 = vector.broadcast %cst_16 : f32 to vector<256x128xf32>
    %32 = arith.maximumf %30, %31 : vector<256x128xf32>
    %c0_17 = arith.constant 0 : index
    %c0_18 = arith.constant 0 : index
    %33 = vector.load %arg6[%c0_17, %c0_18] : memref<128x128xf32, #tpu.memory_space<vmem>>, vector<128x128xf32>
    %cst_19 = arith.constant dense<0.000000e+00> : vector<256x128xf32>
    %34 = tpu.matmul %32, %33, %cst_19 {dimension_numbers = #tpu.dot_dimension_numbers<[1], [0], [0], [1], [0, 0, 1, 1], [], []>} : vector<256x128xf32>, vector<128x128xf32>, vector<256x128xf32> -> vector<256x128xf32>
    %c0_20 = arith.constant 0 : index
    %c0_21 = arith.constant 0 : index
    %35 = vector.load %arg7[%c0_20, %c0_21] : memref<1x128xf32, #tpu.memory_space<vmem>>, vector<1x128xf32>
    %36 = vector.broadcast %35 : vector<1x128xf32> to vector<256x128xf32>
    %37 = arith.addf %34, %36 : vector<256x128xf32>
    %c0_22 = arith.constant 0 : index
    %c0_23 = arith.constant 0 : index
    %38 = vector.load %arg9[%c0_22, %c0_23] : memref<256x128xf32, #tpu.memory_space<vmem>>, vector<256x128xf32>
    tpu.vector_store %arg9[%c0_22, %c0_23], %37 {strides = array<i32>} : memref<256x128xf32, #tpu.memory_space<vmem>>, vector<256x128xf32>,
    return
  }
  func.func @transform_0(%arg0: i32) -> (i32, i32) {
    %c0_i32 = arith.constant 0 : i32
    %c0_i32_0 = arith.constant 0 : i32
    return %arg0, %c0_i32 : i32, i32
  }
  func.func @transform_1(%arg0: i32) -> (i32, i32) {
    %c0_i32 = arith.constant 0 : i32
    %c0_i32_0 = arith.constant 0 : i32
    %c0_i32_1 = arith.constant 0 : i32
    return %c0_i32, %c0_i32_0 : i32, i32
  }
  func.func @transform_2(%arg0: i32) -> (i32, i32) {
    %c0_i32 = arith.constant 0 : i32
    %c0_i32_0 = arith.constant 0 : i32
    %c0_i32_1 = arith.constant 0 : i32
    return %c0_i32, %c0_i32_0 : i32, i32
  }
  func.func @transform_3(%arg0: i32) -> (i32, i32) {
    %c0_i32 = arith.constant 0 : i32
    %c0_i32_0 = arith.constant 0 : i32
    %c0_i32_1 = arith.constant 0 : i32
    return %c0_i32, %c0_i32_0 : i32, i32
  }
  func.func @transform_4(%arg0: i32) -> (i32, i32) {
    %c0_i32 = arith.constant 0 : i32
    %c0_i32_0 = arith.constant 0 : i32
    %c0_i32_1 = arith.constant 0 : i32
    return %c0_i32, %c0_i32_0 : i32, i32
  }
  func.func @transform_5(%arg0: i32) -> (i32, i32) {
    %c0_i32 = arith.constant 0 : i32
    %c0_i32_0 = arith.constant 0 : i32
    %c0_i32_1 = arith.constant 0 : i32
    return %c0_i32, %c0_i32_0 : i32, i32
  }
  func.func @transform_6(%arg0: i32) -> (i32, i32) {
    %c0_i32 = arith.constant 0 : i32
    %c0_i32_0 = arith.constant 0 : i32
    %c0_i32_1 = arith.constant 0 : i32
    return %c0_i32, %c0_i32_0 : i32, i32
  }
  func.func @transform_7(%arg0: i32) -> (i32, i32) {
    %c0_i32 = arith.constant 0 : i32
    %c0_i32_0 = arith.constant 0 : i32
    %c0_i32_1 = arith.constant 0 : i32
    return %c0_i32, %c0_i32_0 : i32, i32
  }
  func.func @transform_8(%arg0: i32) -> (i32, i32) {
    %c0_i32 = arith.constant 0 : i32
    %c0_i32_0 = arith.constant 0 : i32
    return %arg0, %c0_i32 : i32, i32
  }
}

</mosaic_0001>

<bundles_post_ra>
// kernel: tpu_custom_call.1
= control target key start
LH: loop header
LB: loop body
LE: loop exit
PB: predicated region body
PF: predicated region fallthrough
CT: control target
= control target key end

     0   :  { %13 = vsyncpa [#allocation3], 0  ;;  %s2912_s0 = inlined_call_operand.vmem [shape: f32[512,64], index: 0, kind: input, shape index: {}]   ;;  %s2913_s1 = inlined_call_operand.vmem [shape: f32[64,128], index: 1, kind: input, shape index: {}]   ;;  %s2914_s2 = inlined_call_operand.vmem [shape: f32[1,128], index: 2, kind: input, shape index: {}]   ;;  %s2915_s3 = inlined_call_operand.vmem [shape: f32[1,128], index: 3, kind: input, shape index: {}]   ;;  %s2916_s4 = inlined_call_operand.vmem [shape: f32[1,128], index: 4, kind: input, shape index: {}]   ;;  %s2917_s5 = inlined_call_operand.vmem [shape: f32[128,128], index: 5, kind: input, shape index: {}]   ;;  %s2918_s6 = inlined_call_operand.vmem [shape: f32[1,128], index: 6, kind: input, shape index: {}]   ;;  %s2919_s7 = inlined_call_operand.vmem [shape: f32[1,128], index: 7, kind: input, shape index: {}]   ;;  %s2920_s8 = inlined_call_operand.hbm [shape: f32[512,128], index: 8, kind: output, shape index: {}]  }
   0x1   :  { %15 = vsyncpa [#allocation3 + $0x1], 0  ;;  %s1893_s27 = smov 0   ;;  %s1895_s28 = smov 0  }
   0x2   :  { %s1897_s29 = smov 0   ;;  %s1899_s30 = smov 0  }
   0x3 LB: > { %s1914_s9 = sadd.s32 4294967295, %s1844_s30   ;;  %s1584_s10 = sadd.s32 4294967294, %s1844_s30   ;;  %s1844_s30 = sphi %s1899_s30, %s2946_s30   ;;  %s1840_s29 = sphi %s1897_s29, %s2945_s29   ;;  %s1836_s28 = sphi %s1895_s28, %s2944_s28   ;;  %s1832_s27 = sphi %s1893_s27, %s2943_s27  }
   0x4   : > { %s1918_s11 = sadd.s32 1, %s1844_s30   ;;  %s201_s12 = sadd.s32 1, %s1840_s29 }
   0x5   : > { %s198_s13 = ssub.s32 %s1844_s30, %s1918_s11  ;;  %p211_p0 = scmp.ne.s32.totalorder %s1840_s29, %s1836_s28 }
   0x6   : > { %p199_p1 = scmp.eq.s32.totalorder %s198_s13, 0  ;;  %p212_p2 = scmp.eq.s32.totalorder %s1914_s9, 1 }
   0x7   : > { %p217_p3 = scmp.ne.s32.totalorder %s1836_s28, %s1832_s27  ;;  %p218_p4 = scmp.eq.s32.totalorder %s1584_s10, 1 }
   0x8   : > { %s1929_s14 = scalar_select %p199_p1, %s1840_s29, %s201_s12  }
   0x9   : > { %p1931_p5 = por %p212_p2, %p211_p0  ;;  %p1935_p6 = por %p218_p4, %p217_p3 }
   0xa   : > { %p1587_p7 = scmp.ge.s32.totalorder %s1844_s30, 1  ;;  %p266_p8 = scmp.lt.s32.totalorder %s1844_s30, 3 }
   0xc   : > { %p267_p9 = pnand %p1587_p7, %p266_p8 }
   0xd   : > { %s1589_s21 = sshll.u32 (!%p267_p9), %s1914_s9, 5  ;;  %s297_s26 = sand.u32 (!%p267_p9), 1, %s1836_s28  }
   0xe   : > { %270 = sbr.rel (%p267_p9) target bundleno = 880 (0x370), region = 52  ;;  %p301_p10 = scmp.lt.s32.totalorder (!%p267_p9), %s1589_s21, 63 }
   0xf   : > { %s1588_s13 = sshll.u32 (!%p267_p9), %s297_s26, 8  ;;  %s1628_s24 = sshll.u32 (!%p267_p9), %s1914_s9, 8 }
  0x10   : > { %s2649_s19 = scalar_lea.vmem (!%p267_p9), [#allocation2], %s1588_s13  ;;  %s1507_s9 = scalar_lea.sflag (!%p267_p9), [#allocation3], %s297_s26 }
  0x11   : > { %s1519_s13 = sshll.u32 (!%p267_p9), %s2649_s19, 4  ;;  %s1520_s13 = int_to_ptr.vmem [resolvable:$true] %s1519_s13 }
  0x13   : > { %v346_v0 = vld [vmem:[%s2913_s1 + $0x38] sm:$0xff]  ;;  %v345_v1 = vld [vmem:[%s2913_s1 + $0x30] sm:$0xff]  ;;  %v344_v2 = vld [vmem:[%s2913_s1 + $0x28] sm:$0xff]  ;;  %s2948_s21 = smov (!%p301_p10, %s1589_s21), 63  ;;  %vm351_vm0 = vcmask 523264  }
  0x14   : > { %456 = vmatpush.msra.mxu0 %v346_v0  ;;  %1629 = vmatpush.msra.mxu3 %v346_v0  ;;  %v343_v3 = vld [vmem:[%s2913_s1 + $0x20] sm:$0xff]  ;;  %v342_v4 = vld [vmem:[%s2913_s1 + $0x18] sm:$0xff]  ;;  %s1590_s12 = sshll.u32 %s2948_s21, 3  ;;  %v341_v5 = vld [vmem:[%s2913_s1 + $0x10] sm:$0xff]  ;;  %s1802_s21 = scalar_lea.hbm %s2920_s8, 512 }
  0x15   : > { %v340_v6 = vld [vmem:[%s2913_s1 + $0x8] sm:$0xff]  ;;  %s1966_s23 = scalar_lea.vmem %s2912_s0, %s1590_s12  ;;  %v339_v7 = vld [vmem:[%s2913_s1] sm:$0xff]  ;;  %s1518_s12 = scalar_lea.hbm %s2920_s8, %s1628_s24 }
  0x16   : > { %457 = vmatpush.msra.mxu0 %v345_v1  ;;  %1630 = vmatpush.msra.mxu3 %v345_v1  ;;  %v307_v8 = vld [vmem:[%s1966_s23] sm:$0xff]  ;;  %v324_v9 = vld [vmem:[%s1966_s23 + $0x88] sm:$0xff]  ;;  %v325_v11 = vld [vmem:[%s1966_s23 + $0x90] sm:$0xff]  ;;  %s1521_s17 = sshll.u32 %s1518_s12, 4  ;;  %s1522_s17 = int_to_ptr.hbm [resolvable:$true] %s1521_s17 }
  0x17   : > { %v308_v10 = vld [vmem:[%s1966_s23 + $0x8] sm:$0xff]  ;;  %v309_v12 = vld [vmem:[%s1966_s23 + $0x10] sm:$0xff]  ;;  %v326_v13 = vld [vmem:[%s1966_s23 + $0x98] sm:$0xff]  ;;  %s1796_s18 = sshra.s32 %s1522_s17, 4  ;;  %s1797_s18 = int_to_ptr.hbm [resolvable:$true] %s1796_s18 }
  0x18   : > { %458 = vmatpush.msra.mxu0 %v344_v2  ;;  %1631 = vmatpush.msra.mxu3 %v344_v2  ;;  %v310_v14 = vld [vmem:[%s1966_s23 + $0x18] sm:$0xff]  ;;  %v311_v15 = vld [vmem:[%s1966_s23 + $0x20] sm:$0xff]  ;;  %v312_v16 = vld [vmem:[%s1966_s23 + $0x28] sm:$0xff]  ;;  %s1798_s20 = scalar_lea.hbm %s1797_s18, 256  ;;  %p1803_p0 = scmp.lt.s32.totalorder %s1797_s18, %s2920_s8 }
  0x19   : > { %v313_v17 = vld [vmem:[%s1966_s23 + $0x30] sm:$0xff]  ;;  %v327_v18 = vld [vmem:[%s1966_s23 + $0xa0] sm:$0xff]  ;;  %v314_v19 = vld [vmem:[%s1966_s23 + $0x38] sm:$0xff]  ;;  %p1799_p11 = scmp.ne.s32.totalorder %s1797_s18, %s1798_s20  ;;  %p1804_p1 = scmp.lt.s32.totalorder %s1802_s21, %s1798_s20 }
  0x1a   : > { %459 = vmatpush.msra.mxu0 %v343_v3  ;;  %1632 = vmatpush.msra.mxu3 %v343_v3  ;;  %v328_v20 = vld [vmem:[%s1966_s23 + $0xa8] sm:$0xff]  ;;  %v315_v21 = vld [vmem:[%s1966_s23 + $0x40] sm:$0xff]  ;;  %v329_v22 = vld [vmem:[%s1966_s23 + $0xb0] sm:$0xff] }
  0x1b   : > { %v316_v23 = vld [vmem:[%s1966_s23 + $0x48] sm:$0xff]  ;;  %v330_v24 = vld [vmem:[%s1966_s23 + $0xb8] sm:$0xff]  ;;  %v317_v25 = vld [vmem:[%s1966_s23 + $0x50] sm:$0xff]  ;;  %p1800_p12 = pnand %p1799_p11, %p1931_p5  ;;  %p1805_p2 = por %p1804_p1, %p1803_p0 }
  0x1c   : > { %460 = vmatpush.msra.mxu0 %v342_v4  ;;  %1633 = vmatpush.msra.mxu3 %v342_v4  ;;  %v318_v26 = vld [vmem:[%s1966_s23 + $0x58] sm:$0xff]  ;;  %v319_v27 = vld [vmem:[%s1966_s23 + $0x60] sm:$0xff]  ;;  %v320_v28 = vld [vmem:[%s1966_s23 + $0x68] sm:$0xff] }
  0x1d   : > { %v321_v29 = vld [vmem:[%s1966_s23 + $0x70] sm:$0xff]  ;;  %v322_v30 = vld [vmem:[%s1966_s23 + $0x78] sm:$0xff]  ;;  %v2020_v31 = vld [vmem:[%s2914_s2] ss:$0 sm:$0xff]  ;;  %p1801_p13 = pneg %p1800_p12 }
  0x1e   : > { %461 = vmatpush.msra.mxu0 %v341_v5  ;;  %1634 = vmatpush.msra.mxu3 %v341_v5  ;;  %v323_v33 = vld [vmem:[%s1966_s23 + $0x80] sm:$0xff]  ;;  %v332_v62 = vld [vmem:[%s1966_s23 + $0xc8] sm:$0xff]  ;;  %v333_v0 = vld [vmem:[%s1966_s23 + $0xd0] sm:$0xff] }
  0x1f   : > { %v331_v35 = vld [vmem:[%s1966_s23 + $0xc0] sm:$0xff]  ;;  %v334_v2 = vld [vmem:[%s1966_s23 + $0xd8] sm:$0xff]  ;;  %v336_v5 = vld [vmem:[%s1966_s23 + $0xe8] sm:$0xff]  ;;  %p1806_p3 = pnand %p1805_p2, %p1801_p13 }
  0x20   : > { %462 = vmatpush.msra.mxu0 %v340_v6  ;;  %1635 = vmatpush.msra.mxu3 %v340_v6  ;;  %v335_v4 = vld [vmem:[%s1966_s23 + $0xe0] sm:$0xff] }
  0x22   : > { %463 = vmatpush.msra.mxu0 %v339_v7  ;;  %1636 = vmatpush.msra.mxu3 %v339_v7 }
  0x23   : > { %1591 = vmatmul.msk.f32.vlgmr.msra.gmra.mxu0 %vm351_vm0, %v307_v8  ;;  %1608 = vmatmul.msk.f32.vlgmr.msra.gmra.mxu3 %vm351_vm0, %v324_v9 }
  0x2b   : > { %1592 = vmatmul.msk.f32.gmra.mxu0 %vm351_vm0, %v308_v10  ;;  %1609 = vmatmul.msk.f32.gmra.mxu3 %vm351_vm0, %v325_v11  ;;  %v337_v11 = vld [vmem:[%s1966_s23 + $0xf0] sm:$0xff] }
  0x33   : > { %1593 = vmatmul.msk.f32.gmra.mxu0 %vm351_vm0, %v309_v12  ;;  %1610 = vmatmul.msk.f32.gmra.mxu3 %vm351_vm0, %v326_v13 }
  0x3b   : > { %1594 = vmatmul.msk.f32.gmra.mxu0 %vm351_vm0, %v310_v14  ;;  %1611 = vmatmul.msk.f32.gmra.mxu3 %vm351_vm0, %v327_v18  ;;  %v2106_v18 = vld [vmem:[%s2919_s7] ss:$0 sm:$0xff] }
  0x43   : > { %1595 = vmatmul.msk.f32.gmra.mxu0 %vm351_vm0, %v311_v15  ;;  %1612 = vmatmul.msk.f32.gmra.mxu3 %vm351_vm0, %v328_v20 }
  0x4b   : > { %1596 = vmatmul.msk.f32.gmra.mxu0 %vm351_vm0, %v312_v16  ;;  %1613 = vmatmul.msk.f32.gmra.mxu3 %vm351_vm0, %v329_v22 }
  0x53   : > { %1597 = vmatmul.msk.f32.gmra.mxu0 %vm351_vm0, %v313_v17  ;;  %1614 = vmatmul.msk.f32.gmra.mxu3 %vm351_vm0, %v330_v24 }
  0x5b   : > { %1598 = vmatmul.msk.f32.gmra.mxu0 %vm351_vm0, %v314_v19  ;;  %1615 = vmatmul.msk.f32.gmra.mxu3 %vm351_vm0, %v331_v35 }
  0x63   : > { %1599 = vmatmul.msk.f32.gmra.mxu0 %vm351_vm0, %v315_v21  ;;  %1616 = vmatmul.msk.f32.gmra.mxu3 %vm351_vm0, %v332_v62  ;;  %v338_v21 = vld [vmem:[%s1966_s23 + $0xf8] sm:$0xff] }
  0x6b   : > { %1600 = vmatmul.msk.f32.gmra.mxu0 %vm351_vm0, %v316_v23  ;;  %1617 = vmatmul.msk.f32.gmra.mxu3 %vm351_vm0, %v333_v0  ;;  %v1354_v0 = vld [vmem:[%s2917_s5 + $0x68] sm:$0xff] }
  0x73   : > { %1601 = vmatmul.msk.f32.gmra.mxu0 %vm351_vm0, %v317_v25  ;;  %1618 = vmatmul.msk.f32.gmra.mxu3 %vm351_vm0, %v334_v2 }
  0x7b   : > { %1602 = vmatmul.msk.f32.gmra.mxu0 %vm351_vm0, %v318_v26  ;;  %1619 = vmatmul.msk.f32.gmra.mxu3 %vm351_vm0, %v335_v4 }
  0x83   : > { %1603 = vmatmul.msk.f32.gmra.mxu0 %vm351_vm0, %v319_v27  ;;  %1620 = vmatmul.msk.f32.gmra.mxu3 %vm351_vm0, %v336_v5  ;;  %v1353_v5 = vld [vmem:[%s2917_s5 + $0x60] sm:$0xff] }
  0x8b   : > { %1604 = vmatmul.msk.f32.gmra.mxu0 %vm351_vm0, %v320_v28  ;;  %1621 = vmatmul.msk.f32.gmra.mxu3 %vm351_vm0, %v337_v11 }
  0x93   : > { %1605 = vmatmul.msk.f32.gmra.mxu0 %vm351_vm0, %v321_v29  ;;  %1622 = vmatmul.msk.f32.gmra.mxu3 %vm351_vm0, %v338_v21 }
  0x9b   : > { %1606 = vmatmul.msk.f32.gmra.mxu0 %vm351_vm0, %v322_v30 }
  0xa0   : > { %v465_v32 = vpop.f32.mrf.mxu0 }
  0xa1   : > { %v2024_v34 = vadd.f32 %v2020_v31, %v465_v32 }
  0xa3   : > { %1607 = vmatmul.msk.f32.gmra.mxu0 %vm351_vm0, %v323_v33  ;;  %561 = vadd.xlane.f32.xlu0 %v2024_v34 }
  0xa6   : > { %v516_v36 = vpop.f32.mrf.mxu3 }
  0xa7   : > { %v2031_v37 = vadd.f32 %v2020_v31, %v516_v36 }
  0xa8   : > { %v468_v38 = vpop.f32.mrf.mxu0 }
  0xa9   : > { %v2034_v39 = vadd.f32 %v2020_v31, %v468_v38  ;;  %595 = vadd.xlane.f32.xlu2 %v2031_v37 }
  0xab   : > { %563 = vadd.xlane.f32.xlu1 %v2034_v39 }
  0xae   : > { %v519_v40 = vpop.f32.mrf.mxu3 }
  0xaf   : > { %v2086_v9 = vadd.f32 %v2020_v31, %v519_v40 }
  0xb0   : > { %v471_v41 = vpop.f32.mrf.mxu0 }
  0xb1   : > { %v472_v42 = vadd.f32 %v2020_v31, %v471_v41 }
  0xb3   : > { %565 = vadd.xlane.f32.xlu2 %v472_v42 }
  0xb6   : > { %v522_v43 = vpop.f32.mrf.mxu3 }
  0xb7   : > { %v2040_v44 = vadd.f32 %v2020_v31, %v522_v43 }
  0xb8   : > { %v474_v45 = vpop.f32.mrf.mxu0 }
  0xb9   : > { %v2043_v46 = vadd.f32 %v2020_v31, %v474_v45 }
  0xbb   : > { %599 = vadd.xlane.f32.xlu2 %v2040_v44  ;;  %567 = vadd.xlane.f32.xlu1 %v2043_v46 }
  0xbe   : > { %v525_v53 = vpop.f32.mrf.mxu3 }
  0xbf   : > { %v2096_v14 = vadd.f32 %v2020_v31, %v525_v53 }
  0xc0   : > { %v477_v47 = vpop.f32.mrf.mxu0 }
  0xc1   : > { %v2099_v16 = vadd.f32 %v2020_v31, %v477_v47 }
  0xc6   : > { %v528_v55 = vpop.f32.mrf.mxu3 }
  0xc7   : > { %v2115_v24 = vadd.f32 %v2020_v31, %v528_v55 }
  0xc8   : > { %v480_v48 = vpop.f32.mrf.mxu0 }
  0xc9   : > { %v2048_v49 = vadd.f32 %v2020_v31, %v480_v48 }
  0xcb   : > { %571 = vadd.xlane.f32.xlu2 %v2048_v49 }
  0xce   : > { %v531_v57 = vpop.f32.mrf.mxu3 }
  0xcf   : > { %v2118_v25 = vadd.f32 %v2020_v31, %v531_v57  ;;  %v1356_v57 = vld [vmem:[%s2917_s5 + $0x78] sm:$0xff] }
  0xd0   : > { %v483_v50 = vpop.f32.mrf.mxu0  ;;  %1361 = vmatpush.msra.mxu1 %v1356_v57  ;;  %1637 = vmatpush.msra.mxu2 %v1356_v57 }
  0xd1   : > { %v2052_v51 = vadd.f32 %v2020_v31, %v483_v50  ;;  %1638 = vmatpush.msrb.mxu3 %v1356_v57  ;;  %v1345_v57 = vld [vmem:[%s2917_s5 + $0x20] sm:$0xff] }
  0xd3   : > { %573 = vadd.xlane.f32.xlu2 %v2052_v51 }
  0xd6   : > { %v534_v59 = vpop.f32.mrf.mxu3 }
  0xd7   : > { %v2060_v60 = vadd.f32 %v2020_v31, %v534_v59 }
  0xd8   : > { %v2055_v52 = vpop.f32.mrf.mxu0 }
  0xd9   : > { %v2142_v36 = vadd.f32 %v2020_v31, %v2055_v52 }
  0xdb   : > { %607 = vadd.xlane.f32.xlu2 %v2060_v60 }
  0xde   : > { %v537_v40 = vpop.f32.mrf.mxu3 }
  0xe0   : > { %v489_v54 = vpop.f32.mrf.mxu0 }
  0xe1   : > { %v2132_v32 = vadd.f32 %v2020_v31, %v489_v54 }
  0xe8   : > { %v492_v56 = vpop.f32.mrf.mxu0 }
  0xe9   : > { %v2126_v28 = vadd.f32 %v2020_v31, %v492_v56  ;;  %v2166_v56 = vpop.f32.mrf.mxu3 }
  0xf0   : > { %v2057_v58 = vpop.f32.mrf.mxu0 }
  0xf8   : > { %v2063_v61 = vpop.f32.mrf.mxu0 }
 0x100   : > { %v2067_v63 = vpop.f32.mrf.mxu0 }
 0x108   : > { %v2071_v1 = vpop.f32.mrf.mxu0 }
 0x110   : > { %v2075_v3 = vpop.f32.mrf.mxu0 }
 0x116   : > { %v562_v19 = vpop.xlane.xlu0 %561 }
 0x117   : > { %v625_v22 = vmul.f32 0.010416667, %v562_v19  ;;  %v1351_v19 = vld [vmem:[%s2917_s5 + $0x50] sm:$0xff] }
 0x118   : > { %v510_v6 = vpop.f32.mrf.mxu0 }
 0x119   : > { %v2081_v7 = vadd.f32 %v2020_v31, %v510_v6  ;;  %v2121_v26 = vsub.f32 %v2024_v34, %v625_v22 }
 0x11b   : > { %591 = vadd.xlane.f32.xlu0 %v2081_v7  ;;  %v693_v30 = vmul.f32 %v2106_v18, %v2121_v26 }
 0x11c   : > { %v596_v8 = vpop.xlane.xlu2 %595 }
 0x11d   : > { %v725_v34 = vmul.f32 %v693_v30, %v693_v30  ;;  %v642_v41 = vmul.f32 0.010416667, %v596_v8 }
 0x11e   : > { %v564_v27 = vpop.xlane.xlu1 %563 }
 0x11f   : > { %v626_v29 = vmul.f32 0.010416667, %v564_v27 }
 0x120   : > { %v513_v10 = vpop.f32.mrf.mxu0 }
 0x121   : > { %v2090_v12 = vadd.f32 %v2020_v31, %v513_v10  ;;  %v2135_v33 = vsub.f32 %v2034_v39, %v626_v29  ;;  %v2146_v39 = vadd.f32 %v2020_v31, %v537_v40  ;;  %v1352_v10 = vld [vmem:[%s2917_s5 + $0x58] sm:$0xff] }
 0x123   : > { %593 = vadd.xlane.f32.xlu1 %v2090_v12  ;;  %597 = vadd.xlane.f32.xlu0 %v2086_v9  ;;  %v694_v35 = vmul.f32 %v2106_v18, %v2135_v33 }
 0x125   : > { %v726_v38 = vmul.f32 %v694_v35, %v694_v35 }
 0x126   : > { %v566_v13 = vpop.xlane.xlu2 %565 }
 0x127   : > { %v627_v15 = vmul.f32 0.010416667, %v566_v13 }
 0x129   : > { %v2101_v17 = vsub.f32 %v472_v42, %v627_v15  ;;  %v2149_v42 = vsub.f32 %v2031_v37, %v642_v41  ;;  %v2161_v37 = vadd.f32 %v2020_v31, %v2057_v58  ;;  %v1355_v58 = vld [vmem:[%s2917_s5 + $0x70] sm:$0xff]  ;;  %v2190_v15 = vpop.f32.mrf.mxu3  ;;  %v1348_v41 = vld [vmem:[%s2917_s5 + $0x38] sm:$0xff] }
 0x12a   : > { %1362 = vmatpush.msra.mxu1 %v1355_v58  ;;  %1639 = vmatpush.msra.mxu2 %v1355_v58 }
 0x12b   : > { %601 = vadd.xlane.f32.xlu1 %v2096_v14  ;;  %569 = vadd.xlane.f32.xlu0 %v2099_v16  ;;  %v695_v20 = vmul.f32 %v2106_v18, %v2101_v17  ;;  %v710_v47 = vmul.f32 %v2106_v18, %v2149_v42 }
 0x12c   : > { %1640 = vmatpush.msrb.mxu3 %v1355_v58  ;;  %1363 = vmatpush.msra.mxu1 %v1354_v0 }
 0x12d   : > { %v727_v23 = vmul.f32 %v695_v20, %v695_v20  ;;  %v742_v50 = vmul.f32 %v710_v47, %v710_v47  ;;  %1641 = vmatpush.msra.mxu2 %v1354_v0 }
 0x12e   : > { %v568_v43 = vpop.xlane.xlu1 %567  ;;  %v600_v54 = vpop.xlane.xlu2 %599  ;;  %1642 = vmatpush.msrb.mxu3 %v1354_v0  ;;  %1364 = vmatpush.msra.mxu1 %v1353_v5 }
 0x12f   : > { %761 = vadd.xlane.f32.xlu2 %v727_v23  ;;  %v628_v45 = vmul.f32 0.010416667, %v568_v43  ;;  %1643 = vmatpush.msra.mxu2 %v1353_v5  ;;  %v644_v20 = vmul.f32 0.010416667, %v600_v54  ;;  %v1350_v23 = vld [vmem:[%s2917_s5 + $0x48] sm:$0xff] }
 0x130   : > { %1644 = vmatpush.msrb.mxu3 %v1353_v5  ;;  %1365 = vmatpush.msra.mxu1 %v1352_v10 }
 0x131   : > { %v2155_v48 = vsub.f32 %v2043_v46, %v628_v45  ;;  %1645 = vmatpush.msra.mxu2 %v1352_v10 }
 0x132   : > { %1646 = vmatpush.msrb.mxu3 %v1352_v10  ;;  %1366 = vmatpush.msra.mxu1 %v1351_v19 }
 0x133   : > { %605 = vadd.xlane.f32.xlu1 %v2118_v25  ;;  %603 = vadd.xlane.f32.xlu0 %v2115_v24  ;;  %v696_v52 = vmul.f32 %v2106_v18, %v2155_v48 }
 0x134   : > { %1647 = vmatpush.msra.mxu2 %v1351_v19  ;;  %1648 = vmatpush.msrb.mxu3 %v1351_v19  ;;  %v2260_v19 = vadd.f32 %v2020_v31, %v2190_v15 }
 0x135   : > { %v728_v53 = vmul.f32 %v696_v52, %v696_v52  ;;  %1367 = vmatpush.msra.mxu1 %v1350_v23 }
 0x136   : > { %1649 = vmatpush.msra.mxu2 %v1350_v23  ;;  %1650 = vmatpush.msrb.mxu3 %v1350_v23 }
 0x137   : > { %579 = vadd.xlane.f32.xlu2 %v2126_v28 }
 0x13b   : > { %577 = vadd.xlane.f32.xlu1 %v2132_v32  ;;  %757 = vadd.xlane.f32.xlu0 %v725_v34 }
 0x13e   : > { %v2164_v55 = vpop.xlane.xlu2 %571 }
 0x143   : > { %759 = vadd.xlane.f32.xlu1 %v726_v38  ;;  %575 = vadd.xlane.f32.xlu0 %v2142_v36 }
 0x146   : > { %v2182_v4 = vpop.xlane.xlu2 %573 }
 0x14b   : > { %609 = vadd.xlane.f32.xlu0 %v2146_v39 }
 0x14e   : > { %v2208_v30 = vpop.xlane.xlu2 %607 }
 0x153   : > { %791 = vadd.xlane.f32.xlu0 %v742_v50  ;;  %v546_v50 = vpop.f32.mrf.mxu3 }
 0x15b   : > { %763 = vadd.xlane.f32.xlu0 %v728_v53  ;;  %v1346_v53 = vld [vmem:[%s2917_s5 + $0x28] sm:$0xff] }
 0x163   : > { %581 = vadd.xlane.f32.xlu0 %v2161_v37 }
 0x18e   : > { %v592_v46 = vpop.xlane.xlu0 %591 }
 0x18f   : > { %v640_v59 = vmul.f32 0.010416667, %v592_v46 }
 0x191   : > { %v2175_v62 = vsub.f32 %v2081_v7, %v640_v59 }
 0x193   : > { %v708_v2 = vmul.f32 %v2106_v18, %v2175_v62 }
 0x195   : > { %v740_v6 = vmul.f32 %v708_v2, %v708_v2 }
 0x196   : > { %v594_v7 = vpop.xlane.xlu1 %593  ;;  %v598_v8 = vpop.xlane.xlu0 %597 }
 0x197   : > { %v641_v11 = vmul.f32 0.010416667, %v594_v7  ;;  %v643_v13 = vmul.f32 0.010416667, %v598_v8  ;;  %787 = vadd.xlane.f32.xlu1 %v740_v6  ;;  %v1343_v7 = vld [vmem:[%s2917_s5 + $0x10] sm:$0xff] }
 0x198   : > { %v631_v8 = vmul.f32 0.010416667, %v2182_v4  ;;  %v2265_v4 = vpop.f32.mrf.mxu3 }
 0x199   : > { %v2196_v21 = vsub.f32 %v2090_v12, %v641_v11  ;;  %v2199_v22 = vsub.f32 %v2086_v9, %v643_v13  ;;  %v1349_v9 = vld [vmem:[%s2917_s5 + $0x40] sm:$0xff]  ;;  %v2214_v12 = vsub.f32 %v2040_v44, %v644_v20  ;;  %v1347_v44 = vld [vmem:[%s2917_s5 + $0x30] sm:$0xff]  ;;  %v1342_v11 = vld [vmem:[%s2917_s5 + $0x8] sm:$0xff] }
 0x19a   : > { %1368 = vmatpush.msra.mxu1 %v1349_v9  ;;  %1651 = vmatpush.msra.mxu2 %v1349_v9  ;;  %v1341_v20 = vld [vmem:[%s2917_s5] sm:$0xff] }
 0x19b   : > { %v709_v27 = vmul.f32 %v2106_v18, %v2196_v21  ;;  %v711_v29 = vmul.f32 %v2106_v18, %v2199_v22  ;;  %1652 = vmatpush.msrb.mxu3 %v1349_v9  ;;  %v712_v47 = vmul.f32 %v2106_v18, %v2214_v12 }
 0x19c   : > { %1369 = vmatpush.msra.mxu1 %v1348_v41  ;;  %1653 = vmatpush.msra.mxu2 %v1348_v41 }
 0x19d   : > { %v741_v34 = vmul.f32 %v709_v27, %v709_v27  ;;  %v743_v35 = vmul.f32 %v711_v29, %v711_v29  ;;  %1654 = vmatpush.msrb.mxu3 %v1348_v41  ;;  %v744_v59 = vmul.f32 %v712_v47, %v712_v47  ;;  %v2274_v27 = vsub.f32 %v2052_v51, %v631_v8 }
 0x19e   : > { %v602_v38 = vpop.xlane.xlu1 %601  ;;  %v570_v40 = vpop.xlane.xlu0 %569  ;;  %1370 = vmatpush.msra.mxu1 %v1347_v44  ;;  %1655 = vmatpush.msra.mxu2 %v1347_v44 }
 0x19f   : > { %v645_v43 = vmul.f32 0.010416667, %v602_v38  ;;  %789 = vadd.xlane.f32.xlu2 %v741_v34  ;;  %793 = vadd.xlane.f32.xlu1 %v743_v35  ;;  %v629_v52 = vmul.f32 0.010416667, %v570_v40  ;;  %v699_v38 = vmul.f32 %v2106_v18, %v2274_v27 }
 0x1a0   : > { %1656 = vmatpush.msrb.mxu3 %v1347_v44  ;;  %1371 = vmatpush.msra.mxu1 %v1346_v53 }
 0x1a1   : > { %v2223_v45 = vsub.f32 %v2096_v14, %v645_v43  ;;  %v2234_v14 = vadd.f32 %v2020_v31, %v2166_v56  ;;  %1657 = vmatpush.msra.mxu2 %v1346_v53  ;;  %v2240_v0 = vsub.f32 %v2099_v16, %v629_v52  ;;  %v1344_v56 = vld [vmem:[%s2917_s5 + $0x18] sm:$0xff]  ;;  %v630_v16 = vmul.f32 0.010416667, %v2164_v55 }
 0x1a2   : > { %v762_v46 = vpop.xlane.xlu2 %761  ;;  %1658 = vmatpush.msrb.mxu3 %v1346_v53  ;;  %1372 = vmatpush.msra.mxu1 %v1345_v57  ;;  %v2263_v55 = vadd.f32 %v2020_v31, %v546_v50  ;;  %v731_v47 = vmul.f32 %v699_v38, %v699_v38  ;;  %v552_v50 = vpop.f32.mrf.mxu3  ;;  %v2292_v52 = vadd.f32 %v2020_v31, %v2063_v61 }
 0x1a3   : > { %v713_v54 = vmul.f32 %v2106_v18, %v2223_v45  ;;  %1659 = vmatpush.msra.mxu2 %v1345_v57  ;;  %v823_v6 = vmul.f32 0.010416667, %v762_v46  ;;  %v697_v10 = vmul.f32 %v2106_v18, %v2240_v0  ;;  %v2271_v23 = vsub.f32 %v2048_v49, %v630_v16 }
 0x1a4   : > { %1373 = vmatpush.msra.mxu1 %v1344_v56  ;;  %1660 = vmatpush.msrb.mxu3 %v1345_v57 }
 0x1a5   : > { %v745_v58 = vmul.f32 %v713_v54, %v713_v54  ;;  %1661 = vmatpush.msra.mxu2 %v1344_v56  ;;  %v2256_v13 = vadd.f32 1e-05, %v823_v6  ;;  %v729_v9 = vmul.f32 %v697_v10, %v697_v10  ;;  %v698_v51 = vmul.f32 %v2106_v18, %v2271_v23 }
 0x1a6   : > { %v606_v2 = vpop.xlane.xlu1 %605  ;;  %v604_v5 = vpop.xlane.xlu0 %603  ;;  %1374 = vmatpush.msra.mxu1 %v1343_v7  ;;  %1662 = vmatpush.msrb.mxu3 %v1344_v56  ;;  %v2307_v6 = vadd.f32 %v2020_v31, %v2067_v63  ;;  %v2313_v63 = vadd.f32 %v2020_v31, %v552_v50  ;;  %v2329_v50 = vadd.f32 %v2020_v31, %v2265_v4 }
 0x1a7   : > { %795 = vadd.xlane.f32.xlu2 %v744_v59  ;;  %797 = vadd.xlane.f32.xlu0 %v745_v58  ;;  %1715 = vrsqrt.f32 %v2256_v13  ;;  %v647_v49 = vmul.f32 0.010416667, %v606_v2  ;;  %v646_v40 = vmul.f32 0.010416667, %v604_v5  ;;  %v730_v44 = vmul.f32 %v698_v51, %v698_v51 }
 0x1a8   : > { %611 = vadd.xlane.f32.xlu1 %v2234_v14  ;;  %1663 = vmatpush.msra.mxu2 %v1343_v7  ;;  %vm911_vm6 = vweird.f32 %v2256_v13 }
 0x1a9   : > { %1375 = vmatpush.msra.mxu1 %v1342_v11  ;;  %1664 = vmatpush.msrb.mxu3 %v1343_v7  ;;  %v2288_v43 = vsub.f32 %v2118_v25, %v647_v49  ;;  %v2295_v53 = vsub.f32 %v2115_v24, %v646_v40 }
 0x1aa   : > { %1665 = vmatpush.msra.mxu2 %v1342_v11 }
 0x1ab   : > { %1376 = vmatpush.msra.mxu1 %v1341_v20  ;;  %1666 = vmatpush.msrb.mxu3 %v1342_v11  ;;  %v715_v2 = vmul.f32 %v2106_v18, %v2288_v43  ;;  %v714_v24 = vmul.f32 %v2106_v18, %v2295_v53 }
 0x1ac   : > { %1667 = vmatpush.msra.mxu2 %v1341_v20 }
 0x1ad   : > { %1668 = vmatpush.msrb.mxu3 %v1341_v20  ;;  %v2285_v41 = vpop.eup %1715  ;;  %v747_v7 = vmul.f32 %v715_v2, %v715_v2  ;;  %v746_v10 = vmul.f32 %v714_v24, %v714_v24 }
 0x1ae   : > { %v2276_v15 = vpop.xlane.xlu1 %577  ;;  %v758_v29 = vpop.xlane.xlu0 %757  ;;  %v906_v59 = vmul.f32 %v2285_v41, %v2256_v13  ;;  %vm912_vm4 = vweird.f32 %v2285_v41 }
 0x1af   : > { %v821_v34 = vmul.f32 0.010416667, %v758_v29  ;;  %613 = vadd.xlane.f32.xlu2 %v2260_v19  ;;  %615 = vadd.xlane.f32.xlu0 %v2263_v55  ;;  %v555_v29 = vpop.f32.mrf.mxu3  ;;  %vm2349_vm7 = vmor %vm911_vm6, %vm912_vm4 }
 0x1b0   : > { %765 = vadd.xlane.f32.xlu1 %v729_v9  ;;  %v907_v5 = vmul.f32 %v2285_v41, %v906_v59  ;;  %v2316_v38 = vadd.f32 %v2020_v31, %v555_v29 }
 0x1b1   : > { %v853_v35 = vadd.f32 1e-05, %v821_v34 }
 0x1b2   : > { %v908_v11 = vmul.f32 0.5, %v907_v5 }
 0x1b3   : > { %1717 = vrsqrt.f32 %v853_v35  ;;  %vm891_vm2 = vweird.f32 %v853_v35 }
 0x1b4   : > { %v909_v40 = vsub.f32 1.5, %v908_v11 }
 0x1b6   : > { %v760_v54 = vpop.xlane.xlu1 %759  ;;  %v576_v46 = vpop.xlane.xlu0 %575  ;;  %v910_v4 = vmul.f32 %v2285_v41, %v909_v40 }
 0x1b7   : > { %v822_v57 = vmul.f32 0.010416667, %v760_v54  ;;  %767 = vadd.xlane.f32.xlu2 %v730_v44  ;;  %769 = vadd.xlane.f32.xlu0 %v731_v47  ;;  %v632_v34 = vmul.f32 0.010416667, %v576_v46  ;;  %v580_v46 = vpop.xlane.xlu2 %579  ;;  %v558_v40 = vpop.f32.mrf.mxu3 }
 0x1b8   : > { %583 = vadd.xlane.f32.xlu1 %v2292_v52  ;;  %v634_v24 = vmul.f32 0.010416667, %v580_v46  ;;  %v914_v13 = vsel %vm2349_vm7, %v2285_v41, %v910_v4  ;;  %v2384_v46 = vadd.f32 %v2020_v31, %v558_v40 }
 0x1b9   : > { %v1718_v25 = vpop.eup %1717  ;;  %v854_v58 = vadd.f32 1e-05, %v822_v57  ;;  %v2319_v54 = vsub.f32 %v2142_v36, %v632_v34  ;;  %v2340_v36 = vld [vmem:[%s2916_s4] ss:$0 sm:$0xff] }
 0x1ba   : > { %v886_v61 = vmul.f32 %v1718_v25, %v853_v35  ;;  %vm892_vm1 = vweird.f32 %v1718_v25  ;;  %v2325_v35 = vld [vmem:[%s2915_s3] ss:$0 sm:$0xff]  ;;  %v2364_v29 = vsub.f32 %v2126_v28, %v634_v24 }
 0x1bb   : > { %1719 = vrsqrt.f32 %v854_v58  ;;  %vm893_vm3 = vmor %vm891_vm2, %vm892_vm1  ;;  %vm901_vm8 = vweird.f32 %v854_v58 }
 0x1bc   : > { %v887_v56 = vmul.f32 %v1718_v25, %v886_v61 }
 0x1be   : > { %v888_v16 = vmul.f32 0.5, %v887_v56  ;;  %v2309_v8 = vpop.xlane.xlu0 %609  ;;  %v700_v56 = vmul.f32 %v2106_v18, %v2319_v54 }
 0x1bf   : > { %585 = vadd.xlane.f32.xlu2 %v2307_v6  ;;  %801 = vadd.xlane.f32.xlu0 %v747_v7 }
 0x1c0   : > { %v889_v20 = vsub.f32 1.5, %v888_v16  ;;  %799 = vadd.xlane.f32.xlu1 %v746_v10  ;;  %v732_v34 = vmul.f32 %v700_v56, %v700_v56 }
 0x1c1   : > { %v1720_v9 = vpop.eup %1719 }
 0x1c2   : > { %v890_v49 = vmul.f32 %v1718_v25, %v889_v20  ;;  %v896_v51 = vmul.f32 %v1720_v9, %v854_v58  ;;  %vm902_vm5 = vweird.f32 %v1720_v9  ;;  %v2361_v20 = vadd.f32 %v2020_v31, %v2075_v3 }
 0x1c3   : > { %vm903_vm9 = vmor %vm901_vm8, %vm902_vm5  ;;  %v1207_v3 = vmul.f32 %v914_v13, %v2101_v17 }
 0x1c4   : > { %v897_v44 = vmul.f32 %v1720_v9, %v896_v51  ;;  %v894_v47 = vsel %vm893_vm3, %v1718_v25, %v890_v49  ;;  %v648_v25 = vmul.f32 0.010416667, %v2208_v30 }
 0x1c5   : > { %v1205_v57 = vmul.f32 %v894_v47, %v2121_v26  ;;  %v633_v47 = vmul.f32 0.010416667, %v2276_v15  ;;  %v1243_v17 = vmul.f32 %v2325_v35, %v1207_v3 }
 0x1c6   : > { %v898_v59 = vmul.f32 0.5, %v897_v44  ;;  %v2331_v2 = vpop.xlane.xlu0 %791  ;;  %v2354_v10 = vsub.f32 %v2060_v60, %v648_v25  ;;  %v2369_v60 = vadd.f32 %v2020_v31, %v2071_v1  ;;  %v702_v44 = vmul.f32 %v2106_v18, %v2364_v29 }
 0x1c7   : > { %621 = vadd.xlane.f32.xlu2 %v2316_v38  ;;  %619 = vadd.xlane.f32.xlu0 %v2313_v63  ;;  %v1241_v26 = vmul.f32 %v2325_v35, %v1205_v57  ;;  %v2390_v25 = vsub.f32 %v2132_v32, %v633_v47  ;;  %v1279_v15 = vadd.f32 %v2340_v36, %v1243_v17 }
 0x1c8   : > { %v899_v61 = vsub.f32 1.5, %v898_v59  ;;  %617 = vadd.xlane.f32.xlu1 %v2329_v50  ;;  %v716_v28 = vmul.f32 %v2106_v18, %v2354_v10 }
 0x1c9   : > { %v1277_v5 = vadd.f32 %v2340_v36, %v1241_v26  ;;  %v1311_v56 = vmax.f32 %v1279_v15, 0.0 }
 0x1ca   : > { %v900_v16 = vmul.f32 %v1720_v9, %v899_v61  ;;  %v748_v26 = vmul.f32 %v716_v28, %v716_v28 }
 0x1cb   : > { %v1309_v30 = vmax.f32 %v1277_v5, 0.0  ;;  %v701_v5 = vmul.f32 %v2106_v18, %v2390_v25 }
 0x1cc   : > { %v904_v11 = vsel %vm903_vm9, %v1720_v9, %v900_v16 }
 0x1cd   : > { %1377 = vmatmul.f32.vlgmr.msra.gmra.mxu1 %v1309_v30  ;;  %v1206_v58 = vmul.f32 %v904_v11, %v2135_v33  ;;  %v649_v33 = vmul.f32 0.010416667, %v2309_v8  ;;  %v734_v8 = vmul.f32 %v702_v44, %v702_v44  ;;  %v733_v11 = vmul.f32 %v701_v5, %v701_v5 }
 0x1ce   : > { %v764_v9 = vpop.xlane.xlu0 %763 }
 0x1cf   : > { %v824_v49 = vmul.f32 0.010416667, %v764_v9  ;;  %589 = vadd.xlane.f32.xlu0 %v2361_v20  ;;  %771 = vadd.xlane.f32.xlu2 %v732_v34  ;;  %v1242_v41 = vmul.f32 %v2325_v35, %v1206_v58  ;;  %v2387_v59 = vsub.f32 %v2146_v39, %v649_v33  ;;  %v838_v33 = vmul.f32 0.010416667, %v2331_v2 }
 0x1d0   : > { %587 = vadd.xlane.f32.xlu1 %v2369_v60 }
 0x1d1   : > { %v856_v51 = vadd.f32 1e-05, %v824_v49  ;;  %v1278_v1 = vadd.f32 %v2340_v36, %v1242_v41  ;;  %v717_v31 = vmul.f32 %v2106_v18, %v2387_v59  ;;  %v870_v40 = vadd.f32 1e-05, %v838_v33 }
 0x1d3   : > { %1721 = vrsqrt.f32 %v856_v51  ;;  %v1310_v57 = vmax.f32 %v1278_v1, 0.0  ;;  %v749_v16 = vmul.f32 %v717_v31, %v717_v31  ;;  %vm921_vm11 = vweird.f32 %v856_v51 }
 0x1d4   : > { %1723 = vrsqrt.f32 %v870_v40  ;;  %vm1061_vm1 = vweird.f32 %v870_v40 }
 0x1d5   : > { %1380 = vmatmul.f32.gmra.mxu1 %v1310_v57 }
 0x1d6   : > { %v582_v4 = vpop.xlane.xlu0 %581 }
 0x1d7   : > { %775 = vadd.xlane.f32.xlu0 %v734_v8  ;;  %803 = vadd.xlane.f32.xlu2 %v748_v26  ;;  %v635_v24 = vmul.f32 0.010416667, %v582_v4 }
 0x1d8   : > { %623 = vadd.xlane.f32.xlu1 %v2384_v46 }
 0x1d9   : > { %v1722_v61 = vpop.eup %1721  ;;  %v2399_v32 = vsub.f32 %v2161_v37, %v635_v24 }
 0x1da   : > { %v916_v39 = vmul.f32 %v1722_v61, %v856_v51  ;;  %vm922_vm10 = vweird.f32 %v1722_v61  ;;  %v2407_v47 = vpop.eup %1723 }
 0x1db   : > { %v703_v34 = vmul.f32 %v2106_v18, %v2399_v32  ;;  %vm923_vm12 = vmor %vm921_vm11, %vm922_vm10  ;;  %v1056_v57 = vmul.f32 %v2407_v47, %v870_v40  ;;  %vm1062_vm14 = vweird.f32 %v2407_v47 }
 0x1dc   : > { %v917_v7 = vmul.f32 %v1722_v61, %v916_v39  ;;  %vm2438_vm2 = vmor %vm1061_vm1, %vm1062_vm14 }
 0x1dd   : > { %1383 = vmatmul.f32.gmra.mxu1 %v1311_v56  ;;  %v735_v49 = vmul.f32 %v703_v34, %v703_v34  ;;  %v1057_v8 = vmul.f32 %v2407_v47, %v1056_v57 }
 0x1de   : > { %v918_v30 = vmul.f32 0.5, %v917_v7 }
 0x1df   : > { %805 = vadd.xlane.f32.xlu2 %v749_v16  ;;  %v1058_v31 = vmul.f32 0.5, %v1057_v8 }
 0x1e0   : > { %v919_v13 = vsub.f32 1.5, %v918_v30  ;;  %773 = vadd.xlane.f32.xlu1 %v733_v11 }
 0x1e1   : > { %v1059_v16 = vsub.f32 1.5, %v1058_v31 }
 0x1e2   : > { %v920_v58 = vmul.f32 %v1722_v61, %v919_v13 }
 0x1e4   : > { %v924_v9 = vsel %vm923_vm12, %v1722_v61, %v920_v58 }
 0x1e5   : > { %v1208_v41 = vmul.f32 %v924_v9, %v2155_v48 }
 0x1e7   : > { %777 = vadd.xlane.f32.xlu2 %v735_v49  ;;  %v1244_v37 = vmul.f32 %v2325_v35, %v1208_v41 }
 0x1e9   : > { %v1280_v3 = vadd.f32 %v2340_v36, %v1244_v37 }
 0x1eb   : > { %v1312_v28 = vmax.f32 %v1280_v3, 0.0 }
 0x1ed   : > { %1386 = vmatmul.f32.gmra.mxu1 %v1312_v28 }
 0x20a   : > { %v788_v1 = vpop.xlane.xlu1 %787 }
 0x20b   : > { %v836_v44 = vmul.f32 0.010416667, %v788_v1  ;;  %v1060_v1 = vmul.f32 %v2407_v47, %v1059_v16 }
 0x20d   : > { %v868_v51 = vadd.f32 1e-05, %v836_v44  ;;  %v1064_v40 = vsel %vm2438_vm2, %v2407_v47, %v1060_v1 }
 0x20f   : > { %1725 = vrsqrt.f32 %v868_v51  ;;  %vm1041_vm15 = vweird.f32 %v868_v51 }
 0x212   : > { %v790_v48 = vpop.xlane.xlu2 %789  ;;  %v794_v17 = vpop.xlane.xlu1 %793 }
 0x213   : > { %v837_v26 = vmul.f32 0.010416667, %v790_v48  ;;  %v839_v4 = vmul.f32 0.010416667, %v794_v17 }
 0x215   : > { %v1726_v15 = vpop.eup %1725  ;;  %v2411_v61 = vadd.f32 1e-05, %v837_v26  ;;  %v2413_v2 = vadd.f32 1e-05, %v839_v4 }
 0x216   : > { %v1036_v24 = vmul.f32 %v1726_v15, %v868_v51  ;;  %vm1042_vm13 = vweird.f32 %v1726_v15 }
 0x217   : > { %1727 = vrsqrt.f32 %v2411_v61  ;;  %vm1043_vm0 = vmor %vm1041_vm15, %vm1042_vm13  ;;  %vm1051_vm4 = vweird.f32 %v2411_v61  ;;  %vm1071_vm7 = vweird.f32 %v2413_v2 }
 0x218   : > { %v1037_v39 = vmul.f32 %v1726_v15, %v1036_v24  ;;  %1729 = vrsqrt.f32 %v2413_v2 }
 0x21a   : > { %v1038_v5 = vmul.f32 0.5, %v1037_v39  ;;  %v796_v56 = vpop.xlane.xlu2 %795  ;;  %v798_v7 = vpop.xlane.xlu0 %797 }
 0x21b   : > { %v840_v30 = vmul.f32 0.010416667, %v796_v56  ;;  %v612_v11 = vpop.xlane.xlu1 %611  ;;  %v841_v13 = vmul.f32 0.010416667, %v798_v7 }
 0x21c   : > { %v1039_v34 = vsub.f32 1.5, %v1038_v5  ;;  %v650_v58 = vmul.f32 0.010416667, %v612_v11 }
 0x21d   : > { %v1728_v9 = vpop.eup %1727  ;;  %v2417_v49 = vadd.f32 1e-05, %v840_v30  ;;  %v2419_v41 = vadd.f32 1e-05, %v841_v13 }
 0x21e   : > { %v2421_v37 = vpop.eup %1729  ;;  %v1040_v3 = vmul.f32 %v1726_v15, %v1039_v34  ;;  %v1046_v28 = vmul.f32 %v1728_v9, %v2411_v61  ;;  %v2426_v33 = vsub.f32 %v2234_v14, %v650_v58  ;;  %vm1052_vm3 = vweird.f32 %v1728_v9 }
 0x21f   : > { %v1066_v44 = vmul.f32 %v2421_v37, %v2413_v2  ;;  %1731 = vrsqrt.f32 %v2417_v49  ;;  %vm1053_vm5 = vmor %vm1051_vm4, %vm1052_vm3  ;;  %vm1072_vm6 = vweird.f32 %v2421_v37  ;;  %vm1081_vm9 = vweird.f32 %v2417_v49 }
 0x220   : > { %v1047_v57 = vmul.f32 %v1728_v9, %v1046_v28  ;;  %1733 = vrsqrt.f32 %v2419_v41  ;;  %v718_v48 = vmul.f32 %v2106_v18, %v2426_v33  ;;  %v1044_v14 = vsel %vm1043_vm0, %v1726_v15, %v1040_v3  ;;  %vm2485_vm8 = vmor %vm1071_vm7, %vm1072_vm6 }
 0x221   : > { %v1067_v17 = vmul.f32 %v2421_v37, %v1066_v44  ;;  %v1220_v31 = vmul.f32 %v1044_v14, %v2175_v62  ;;  %v1222_v28 = vmul.f32 %v1064_v40, %v2149_v42  ;;  %vm1091_vm10 = vweird.f32 %v2419_v41 }
 0x222   : > { %v1048_v8 = vmul.f32 0.5, %v1047_v57  ;;  %v614_v26 = vpop.xlane.xlu2 %613  ;;  %v616_v4 = vpop.xlane.xlu0 %615  ;;  %v750_v24 = vmul.f32 %v718_v48, %v718_v48 }
 0x223   : > { %v1068_v39 = vmul.f32 0.5, %v1067_v17  ;;  %v651_v5 = vmul.f32 0.010416667, %v614_v26  ;;  %v766_v56 = vpop.xlane.xlu1 %765  ;;  %v652_v7 = vmul.f32 0.010416667, %v616_v4  ;;  %v1256_v30 = vmul.f32 %v2325_v35, %v1220_v31 }
 0x224   : > { %v1049_v15 = vsub.f32 1.5, %v1048_v8  ;;  %v825_v16 = vmul.f32 0.010416667, %v766_v56  ;;  %807 = vadd.xlane.f32.xlu1 %v750_v24  ;;  %v1258_v26 = vmul.f32 %v2325_v35, %v1222_v28 }
 0x225   : > { %v2447_v11 = vpop.eup %1731  ;;  %v2450_v13 = vsub.f32 %v2260_v19, %v651_v5  ;;  %v2453_v62 = vsub.f32 %v2263_v55, %v652_v7  ;;  %v1069_v1 = vsub.f32 1.5, %v1068_v39  ;;  %v1292_v44 = vadd.f32 %v2340_v36, %v1256_v30 }
 0x226   : > { %v2455_v34 = vpop.eup %1733  ;;  %v1050_v58 = vmul.f32 %v1728_v9, %v1049_v15  ;;  %v1076_v47 = vmul.f32 %v2447_v11, %v2417_v49  ;;  %v2459_v3 = vadd.f32 1e-05, %v825_v16  ;;  %v1294_v28 = vadd.f32 %v2340_v36, %v1258_v26 }
 0x227   : > { %v1086_v55 = vmul.f32 %v2455_v34, %v2419_v41  ;;  %v719_v57 = vmul.f32 %v2106_v18, %v2450_v13  ;;  %v1324_v48 = vmax.f32 %v1292_v44, 0.0  ;;  %v720_v42 = vmul.f32 %v2106_v18, %v2453_v62 }
 0x228   : > { %v1077_v19 = vmul.f32 %v2447_v11, %v1076_v47  ;;  %1735 = vrsqrt.f32 %v2459_v3  ;;  %v1054_v17 = vsel %vm1053_vm5, %v1728_v9, %v1050_v58  ;;  %v1070_v4 = vmul.f32 %v2421_v37, %v1069_v1 }
 0x229   : > { %v751_v51 = vmul.f32 %v719_v57, %v719_v57  ;;  %v1221_v8 = vmul.f32 %v1054_v17, %v2196_v21  ;;  %1422 = vmatmul.f32.vlgmr.msra.gmra.mxu2 %v1324_v48  ;;  %v752_v5 = vmul.f32 %v720_v42, %v720_v42  ;;  %v1087_v7 = vmul.f32 %v2455_v34, %v1086_v55 }
 0x22a   : > { %v768_v61 = vpop.xlane.xlu2 %767  ;;  %v770_v14 = vpop.xlane.xlu0 %769  ;;  %v1078_v56 = vmul.f32 0.5, %v1077_v19  ;;  %v1074_v1 = vsel %vm2485_vm8, %v2421_v37, %v1070_v4  ;;  %v1326_v17 = vmax.f32 %v1294_v28, 0.0  ;;  %vm1082_vm11 = vweird.f32 %v2447_v11 }
 0x22b   : > { %v826_v24 = vmul.f32 0.010416667, %v768_v61  ;;  %v584_v31 = vpop.xlane.xlu1 %583  ;;  %v827_v39 = vmul.f32 0.010416667, %v770_v14  ;;  %809 = vadd.xlane.f32.xlu0 %v751_v51  ;;  %v1257_v40 = vmul.f32 %v2325_v35, %v1221_v8  ;;  %811 = vadd.xlane.f32.xlu2 %v752_v5  ;;  %v1088_v19 = vmul.f32 0.5, %v1087_v7  ;;  %vm2524_vm14 = vmor %vm1081_vm9, %vm1082_vm11 }
 0x22c   : > { %v636_v9 = vmul.f32 0.010416667, %v584_v31  ;;  %v1079_v44 = vsub.f32 1.5, %v1078_v56  ;;  %v1223_v61 = vmul.f32 %v1074_v1, %v2199_v22  ;;  %vm1092_vm13 = vweird.f32 %v2455_v34 }
 0x22d   : > { %v2479_v15 = vadd.f32 1e-05, %v826_v24  ;;  %v2481_v21 = vadd.f32 1e-05, %v827_v39  ;;  %v1293_v47 = vadd.f32 %v2340_v36, %v1257_v40  ;;  %v1089_v24 = vsub.f32 1.5, %v1088_v19  ;;  %vm2553_vm3 = vmor %vm1091_vm10, %vm1092_vm13 }
 0x22e   : > { %v1736_v16 = vpop.eup %1735  ;;  %v2490_v58 = vsub.f32 %v2292_v52, %v636_v9  ;;  %v1080_v4 = vmul.f32 %v2447_v11, %v1079_v44  ;;  %v1259_v30 = vmul.f32 %v2325_v35, %v1223_v61  ;;  %vm931_vm15 = vweird.f32 %v2459_v3 }
 0x22f   : > { %v926_v2 = vmul.f32 %v1736_v16, %v2459_v3  ;;  %1737 = vrsqrt.f32 %v2479_v15  ;;  %v1325_v55 = vmax.f32 %v1293_v47, 0.0  ;;  %vm932_vm12 = vweird.f32 %v1736_v16 }
 0x230   : > { %1739 = vrsqrt.f32 %v2481_v21  ;;  %v704_v52 = vmul.f32 %v2106_v18, %v2490_v58  ;;  %vm933_vm0 = vmor %vm931_vm15, %vm932_vm12  ;;  %v1084_v49 = vsel %vm2524_vm14, %v2447_v11, %v1080_v4  ;;  %vm941_vm1 = vweird.f32 %v2479_v15 }
 0x231   : > { %v927_v57 = vmul.f32 %v1736_v16, %v926_v2  ;;  %1425 = vmatmul.f32.gmra.mxu2 %v1325_v55  ;;  %v2533_v2 = vmul.f32 %v2455_v34, %v1089_v24  ;;  %vm951_vm2 = vweird.f32 %v2481_v21 }
 0x232   : > { %v586_v48 = vpop.xlane.xlu2 %585  ;;  %v802_v42 = vpop.xlane.xlu0 %801  ;;  %v736_v26 = vmul.f32 %v704_v52, %v704_v52 }
 0x233   : > { %v928_v14 = vmul.f32 0.5, %v927_v57  ;;  %v637_v37 = vmul.f32 0.010416667, %v586_v48  ;;  %v800_v51 = vpop.xlane.xlu1 %799  ;;  %v843_v8 = vmul.f32 0.010416667, %v802_v42  ;;  %v1295_v42 = vadd.f32 %v2340_v36, %v1259_v30 }
 0x234   : > { %v842_v31 = vmul.f32 0.010416667, %v800_v51  ;;  %779 = vadd.xlane.f32.xlu1 %v736_v26  ;;  %v1224_v51 = vmul.f32 %v1084_v49, %v2214_v12  ;;  %v1094_v41 = vsel %vm2553_vm3, %v2455_v34, %v2533_v2 }
 0x235   : > { %v2507_v39 = vpop.eup %1737  ;;  %v929_v5 = vsub.f32 1.5, %v928_v14  ;;  %v2510_v22 = vsub.f32 %v2307_v6, %v637_v37  ;;  %v2512_v56 = vadd.f32 1e-05, %v843_v8 }
 0x236   : > { %v2514_v7 = vpop.eup %1739  ;;  %v936_v9 = vmul.f32 %v2507_v39, %v2479_v15  ;;  %v2519_v40 = vadd.f32 1e-05, %v842_v31  ;;  %vm942_vm4 = vweird.f32 %v2507_v39 }
 0x237   : > { %v930_v6 = vmul.f32 %v1736_v16, %v929_v5  ;;  %v946_v28 = vmul.f32 %v2514_v7, %v2481_v21  ;;  %1741 = vrsqrt.f32 %v2512_v56  ;;  %v705_v44 = vmul.f32 %v2106_v18, %v2510_v22  ;;  %vm943_vm6 = vmor %vm941_vm1, %vm942_vm4 }
 0x238   : > { %v937_v1 = vmul.f32 %v2507_v39, %v936_v9  ;;  %1743 = vrsqrt.f32 %v2519_v40  ;;  %vm952_vm5 = vweird.f32 %v2514_v7  ;;  %vm1101_vm9 = vweird.f32 %v2519_v40 }
 0x239   : > { %v947_v3 = vmul.f32 %v2514_v7, %v946_v28  ;;  %v934_v19 = vsel %vm933_vm0, %v1736_v16, %v930_v6  ;;  %1428 = vmatmul.f32.gmra.mxu2 %v1326_v17  ;;  %v737_v37 = vmul.f32 %v705_v44, %v705_v44  ;;  %v1260_v6 = vmul.f32 %v2325_v35, %v1224_v51  ;;  %vm2594_vm7 = vmor %vm951_vm2, %vm952_vm5 }
 0x23a   : > { %v938_v55 = vmul.f32 0.5, %v937_v1  ;;  %v622_v57 = vpop.xlane.xlu2 %621  ;;  %v620_v52 = vpop.xlane.xlu0 %619  ;;  %v1209_v48 = vmul.f32 %v934_v19, %v2240_v0  ;;  %v1327_v44 = vmax.f32 %v1295_v42, 0.0  ;;  %vm1111_vm12 = vweird.f32 %v2512_v56 }
 0x23b   : > { %v948_v61 = vmul.f32 0.5, %v947_v3  ;;  %v655_v11 = vmul.f32 0.010416667, %v622_v57  ;;  %v618_v14 = vpop.xlane.xlu1 %617  ;;  %781 = vadd.xlane.f32.xlu0 %v737_v37  ;;  %v654_v30 = vmul.f32 0.010416667, %v620_v52  ;;  %v1225_v37 = vmul.f32 %v1094_v41, %v2223_v45 }
 0x23c   : > { %v939_v8 = vsub.f32 1.5, %v938_v55  ;;  %v653_v0 = vmul.f32 0.010416667, %v618_v14  ;;  %v1245_v26 = vmul.f32 %v2325_v35, %v1209_v48 }
 0x23d   : > { %v2559_v17 = vpop.eup %1741  ;;  %v949_v4 = vsub.f32 1.5, %v948_v61  ;;  %v2563_v12 = vsub.f32 %v2316_v38, %v655_v11  ;;  %v2601_v55 = vsub.f32 %v2313_v63, %v654_v30  ;;  %v1296_v63 = vadd.f32 %v2340_v36, %v1260_v6 }
 0x23e   : > { %v2569_v24 = vpop.eup %1743  ;;  %v940_v31 = vmul.f32 %v2507_v39, %v939_v8  ;;  %v1106_v5 = vmul.f32 %v2559_v17, %v2512_v56  ;;  %v2575_v9 = vsub.f32 %v2329_v50, %v653_v0  ;;  %v1281_v34 = vadd.f32 %v2340_v36, %v1245_v26 }
 0x23f   : > { %v950_v38 = vmul.f32 %v2514_v7, %v949_v4  ;;  %v1096_v47 = vmul.f32 %v2569_v24, %v2519_v40  ;;  %v723_v50 = vmul.f32 %v2106_v18, %v2563_v12  ;;  %vm1102_vm8 = vweird.f32 %v2569_v24  ;;  %v1779_v4 = vld [vmem:[%s2919_s7] ss:$0 sm:$0xff] }
 0x240   : > { %v1107_v28 = vmul.f32 %v2559_v17, %v1106_v5  ;;  %v721_v2 = vmul.f32 %v2106_v18, %v2575_v9  ;;  %v944_v15 = vsel %vm943_vm6, %v2507_v39, %v940_v31  ;;  %v1313_v3 = vmax.f32 %v1281_v34, 0.0  ;;  %vm2634_vm10 = vmor %vm1101_vm9, %vm1102_vm8 }
 0x241   : > { %v1097_v49 = vmul.f32 %v2569_v24, %v1096_v47  ;;  %v1210_v19 = vmul.f32 %v944_v15, %v2271_v23  ;;  %v755_v52 = vmul.f32 %v723_v50, %v723_v50  ;;  %v954_v21 = vsel %vm2594_vm7, %v2514_v7, %v950_v38  ;;  %1431 = vmatmul.f32.gmra.mxu2 %v1327_v44 }
 0x242   : > { %v772_v18 = vpop.xlane.xlu2 %771  ;;  %v590_v39 = vpop.xlane.xlu0 %589  ;;  %v753_v57 = vmul.f32 %v721_v2, %v721_v2  ;;  %1389 = vmatmul.f32.gmra.mxu1 %v1313_v3  ;;  %v1108_v23 = vmul.f32 0.5, %v1107_v28  ;;  %v1211_v8 = vmul.f32 %v954_v21, %v2274_v27  ;;  %v722_v31 = vmul.f32 %v1779_v4, %v2601_v55  ;;  %v2629_v27 = vld [vmem:[%s2918_s6] ss:$0 sm:$0xff] }
 0x243   : > { %v1098_v48 = vmul.f32 0.5, %v1097_v49  ;;  %v588_v61 = vpop.xlane.xlu1 %587  ;;  %v828_v11 = vmul.f32 0.010416667, %v772_v18  ;;  %v1246_v42 = vmul.f32 %v2325_v35, %v1210_v19  ;;  %817 = vadd.xlane.f32.xlu2 %v755_v52  ;;  %v639_v26 = vmul.f32 0.010416667, %v590_v39 }
 0x244   : > { %v638_v14 = vmul.f32 0.010416667, %v588_v61  ;;  %813 = vadd.xlane.f32.xlu1 %v753_v57  ;;  %v1261_v5 = vmul.f32 %v2325_v35, %v1225_v37  ;;  %v1109_v38 = vsub.f32 1.5, %v1108_v23  ;;  %v1328_v47 = vmax.f32 %v1296_v63, 0.0 }
 0x245   : > { %v1099_v51 = vsub.f32 1.5, %v1098_v48  ;;  %v2610_v16 = vadd.f32 1e-05, %v828_v11  ;;  %v1282_v7 = vadd.f32 %v2340_v36, %v1246_v42  ;;  %v1247_v34 = vmul.f32 %v2325_v35, %v1211_v8 }
 0x246   : > { %v2616_v0 = vsub.f32 %v2369_v60, %v638_v14  ;;  %v2640_v6 = vsub.f32 %v2361_v20, %v639_v26  ;;  %v754_v15 = vmul.f32 %v722_v31, %v722_v31  ;;  %vm1112_vm11 = vweird.f32 %v2559_v17 }
 0x247   : > { %v1100_v45 = vmul.f32 %v2569_v24, %v1099_v51  ;;  %1745 = vrsqrt.f32 %v2610_v16  ;;  %v1314_v41 = vmax.f32 %v1282_v7, 0.0  ;;  %v1297_v18 = vadd.f32 %v2340_v36, %v1261_v5  ;;  %vm2669_vm13 = vmor %vm1111_vm12, %vm1112_vm11 }
 0x248   : > { %v706_v60 = vmul.f32 %v1779_v4, %v2616_v0  ;;  %v1110_v57 = vmul.f32 %v2559_v17, %v1109_v38  ;;  %v1283_v52 = vadd.f32 %v2340_v36, %v1247_v34  ;;  %v707_v42 = vmul.f32 %v1779_v4, %v2640_v6 }
 0x249   : > { %v1104_v40 = vsel %vm2634_vm10, %v2569_v24, %v1100_v45  ;;  %1434 = vmatmul.f32.gmra.mxu2 %v1328_v47  ;;  %v1329_v63 = vmax.f32 %v1297_v18, 0.0  ;;  %vm961_vm15 = vweird.f32 %v2610_v16 }
 0x24a   : > { %v1378_v28 = vpop.f32.mrf.mxu1  ;;  %v804_v2 = vpop.xlane.xlu2 %803  ;;  %v738_v50 = vmul.f32 %v706_v60, %v706_v60  ;;  %1392 = vmatmul.f32.gmra.mxu1 %v1314_v41  ;;  %v1226_v21 = vmul.f32 %v1104_v40, %v2295_v53  ;;  %v739_v26 = vmul.f32 %v707_v42, %v707_v42 }
 0x24b   : > { %v624_v1 = vpop.xlane.xlu1 %623  ;;  %v1379_v49 = vadd.f32 %v2629_v27, %v1378_v28  ;;  %v844_v3 = vmul.f32 0.010416667, %v804_v2  ;;  %v776_v44 = vpop.xlane.xlu0 %775 }
 0x24c   : > { %v656_v19 = vmul.f32 0.010416667, %v624_v1  ;;  %v830_v20 = vmul.f32 0.010416667, %v776_v44  ;;  %783 = vadd.xlane.f32.xlu0 %v738_v50  ;;  %815 = vadd.xlane.f32.xlu1 %v754_v15  ;;  %v1262_v37 = vmul.f32 %v2325_v35, %v1226_v21 }
 0x24d   : > { %v1746_v39 = vpop.eup %1745  ;;  %1474 = vst [vmem:[%s2649_s19] sm:$0xff] %v1379_v49  ;;  %v2652_v24 = vadd.f32 1e-05, %v844_v3 }
 0x24e   : > { %v956_v48 = vmul.f32 %v1746_v39, %v2610_v16  ;;  %v2658_v61 = vsub.f32 %v2384_v46, %v656_v19  ;;  %v2660_v11 = vadd.f32 1e-05, %v830_v20  ;;  %v1315_v46 = vmax.f32 %v1283_v52, 0.0 }
 0x24f   : > { %1747 = vrsqrt.f32 %v2652_v24  ;;  %vm962_vm14 = vweird.f32 %v1746_v39  ;;  %v1298_v47 = vadd.f32 %v2340_v36, %v1262_v37  ;;  %vm1121_vm2 = vweird.f32 %v2652_v24 }
 0x250   : > { %v957_v23 = vmul.f32 %v1746_v39, %v956_v48  ;;  %1749 = vrsqrt.f32 %v2660_v11  ;;  %v724_v14 = vmul.f32 %v1779_v4, %v2658_v61  ;;  %v1114_v4 = vsel %vm2669_vm13, %v2559_v17, %v1110_v57  ;;  %vm963_vm0 = vmor %vm961_vm15, %vm962_vm14 }
 0x251   : > { %1437 = vmatmul.f32.gmra.mxu2 %v1329_v63  ;;  %v1227_v34 = vmul.f32 %v1114_v4, %v2288_v43  ;;  %v1330_v49 = vmax.f32 %v1298_v47, 0.0  ;;  %vm981_vm5 = vweird.f32 %v2660_v11 }
 0x252   : > { %v958_v51 = vmul.f32 0.5, %v957_v23  ;;  %v1381_v7 = vpop.f32.mrf.mxu1  ;;  %v806_v8 = vpop.xlane.xlu2 %805  ;;  %v756_v56 = vmul.f32 %v724_v14, %v724_v14  ;;  %1395 = vmatmul.f32.gmra.mxu1 %v1315_v46 }
 0x253   : > { %v774_v31 = vpop.xlane.xlu1 %773  ;;  %v1382_v45 = vadd.f32 %v2629_v27, %v1381_v7  ;;  %v845_v41 = vmul.f32 0.010416667, %v806_v8  ;;  %v1263_v16 = vmul.f32 %v2325_v35, %v1227_v34 }
 0x254   : > { %v959_v60 = vsub.f32 1.5, %v958_v51  ;;  %v829_v5 = vmul.f32 0.010416667, %v774_v31  ;;  %819 = vadd.xlane.f32.xlu2 %v756_v56  ;;  %785 = vadd.xlane.f32.xlu0 %v739_v26 }
 0x255   : > { %v1748_v30 = vpop.eup %1747  ;;  %1475 = vst [vmem:[%s2649_s19 + $0x8] sm:$0xff] %v1382_v45  ;;  %v2679_v38 = vadd.f32 1e-05, %v845_v41 }
 0x256   : > { %v2683_v17 = vpop.eup %1749  ;;  %v960_v28 = vmul.f32 %v1746_v39, %v959_v60  ;;  %v1116_v2 = vmul.f32 %v1748_v30, %v2652_v24  ;;  %v861_v50 = vadd.f32 1e-05, %v829_v5  ;;  %vm1122_vm1 = vweird.f32 %v1748_v30 }
 0x257   : > { %v976_v15 = vmul.f32 %v2683_v17, %v2660_v11  ;;  %1751 = vrsqrt.f32 %v2679_v38  ;;  %vm1123_vm3 = vmor %vm1121_vm2, %vm1122_vm1  ;;  %vm982_vm4 = vweird.f32 %v2683_v17  ;;  %vm1131_vm9 = vweird.f32 %v2679_v38 }
 0x258   : > { %v1117_v40 = vmul.f32 %v1748_v30, %v1116_v2  ;;  %1753 = vrsqrt.f32 %v861_v50  ;;  %v964_v1 = vsel %vm963_vm0, %v1746_v39, %v960_v28  ;;  %vm2706_vm8 = vmor %vm981_vm5, %vm982_vm4  ;;  %vm971_vm10 = vweird.f32 %v861_v50 }
 0x259   : > { %v977_v43 = vmul.f32 %v2683_v17, %v976_v15  ;;  %v1212_v3 = vmul.f32 %v964_v1, %v2319_v54  ;;  %1440 = vmatmul.f32.gmra.mxu2 %v1330_v49  ;;  %v1299_v54 = vadd.f32 %v2340_v36, %v1263_v16 }
 0x25a   : > { %v1118_v44 = vmul.f32 0.5, %v1117_v40  ;;  %v1384_v19 = vpop.f32.mrf.mxu1  ;;  %v778_v20 = vpop.xlane.xlu2 %777 }
 0x25b   : > { %v1385_v18 = vadd.f32 %v2629_v27, %v1384_v19  ;;  %v831_v57 = vmul.f32 0.010416667, %v778_v20  ;;  %v1248_v52 = vmul.f32 %v2325_v35, %v1212_v3  ;;  %v978_v48 = vmul.f32 0.5, %v977_v43 }
 0x25c   : > { %v1119_v21 = vsub.f32 1.5, %v1118_v44  ;;  %v1331_v26 = vmax.f32 %v1299_v54, 0.0 }
 0x25d   : > { %v1752_v39 = vpop.eup %1751  ;;  %1476 = vst [vmem:[%s2649_s19 + $0x10] sm:$0xff] %v1385_v18  ;;  %v863_v42 = vadd.f32 1e-05, %v831_v57  ;;  %v1284_v23 = vadd.f32 %v2340_v36, %v1248_v52  ;;  %v979_v8 = vsub.f32 1.5, %v978_v48 }
 0x25e   : > { %v1754_v14 = vpop.eup %1753  ;;  %v1120_v53 = vmul.f32 %v1748_v30, %v1119_v21  ;;  %v1126_v46 = vmul.f32 %v1752_v39, %v2679_v38  ;;  %vm1132_vm6 = vweird.f32 %v1752_v39 }
 0x25f   : > { %v966_v63 = vmul.f32 %v1754_v14, %v861_v50  ;;  %1755 = vrsqrt.f32 %v863_v42  ;;  %v1316_v51 = vmax.f32 %v1284_v23, 0.0  ;;  %v980_v5 = vmul.f32 %v2683_v17, %v979_v8  ;;  %vm1133_vm11 = vmor %vm1131_vm9, %vm1132_vm6 }
 0x260   : > { %v1127_v37 = vmul.f32 %v1752_v39, %v1126_v46  ;;  %v1124_v7 = vsel %vm1123_vm3, %v1748_v30, %v1120_v53  ;;  %vm972_vm7 = vweird.f32 %v1754_v14  ;;  %vm991_vm14 = vweird.f32 %v863_v42 }
 0x261   : > { %v967_v56 = vmul.f32 %v1754_v14, %v966_v63  ;;  %v1228_v4 = vmul.f32 %v1124_v7, %v2354_v10  ;;  %1398 = vmatmul.f32.gmra.mxu1 %v1316_v51  ;;  %1443 = vmatmul.f32.gmra.mxu2 %v1331_v26  ;;  %vm973_vm12 = vmor %vm971_vm10, %vm972_vm7  ;;  %v984_v49 = vsel %vm2706_vm8, %v2683_v17, %v980_v5 }
 0x262   : > { %v1128_v31 = vmul.f32 0.5, %v1127_v37  ;;  %v1214_v18 = vmul.f32 %v984_v49, %v2364_v29 }
 0x263   : > { %v968_v45 = vmul.f32 0.5, %v967_v56  ;;  %v1264_v24 = vmul.f32 %v2325_v35, %v1228_v4 }
 0x264   : > { %v1129_v41 = vsub.f32 1.5, %v1128_v31  ;;  %v1250_v21 = vmul.f32 %v2325_v35, %v1214_v18 }
 0x265   : > { %v1756_v60 = vpop.eup %1755  ;;  %v969_v30 = vsub.f32 1.5, %v968_v45  ;;  %v1300_v47 = vadd.f32 %v2340_v36, %v1264_v24 }
 0x266   : > { %v1130_v34 = vmul.f32 %v1752_v39, %v1129_v41  ;;  %v986_v28 = vmul.f32 %v1756_v60, %v863_v42  ;;  %vm992_vm13 = vweird.f32 %v1756_v60  ;;  %v1286_v48 = vadd.f32 %v2340_v36, %v1250_v21 }
 0x267   : > { %v970_v2 = vmul.f32 %v1754_v14, %v969_v30  ;;  %v1332_v11 = vmax.f32 %v1300_v47, 0.0  ;;  %vm993_vm15 = vmor %vm991_vm14, %vm992_vm13 }
 0x268   : > { %v987_v15 = vmul.f32 %v1756_v60, %v986_v28  ;;  %v1134_v40 = vsel %vm1133_vm11, %v1752_v39, %v1130_v34  ;;  %v1318_v23 = vmax.f32 %v1286_v48, 0.0 }
 0x269   : > { %v974_v1 = vsel %vm973_vm12, %v1754_v14, %v970_v2  ;;  %v1229_v43 = vmul.f32 %v1134_v40, %v2387_v59  ;;  %1446 = vmatmul.f32.gmra.mxu2 %v1332_v11 }
 0x26a   : > { %v988_v3 = vmul.f32 0.5, %v987_v15  ;;  %v1387_v16 = vpop.f32.mrf.mxu1  ;;  %v1213_v38 = vmul.f32 %v974_v1, %v2390_v25 }
 0x26b   : > { %v1388_v50 = vadd.f32 %v2629_v27, %v1387_v16  ;;  %v1265_v44 = vmul.f32 %v2325_v35, %v1229_v43 }
 0x26c   : > { %v989_v19 = vsub.f32 1.5, %v988_v3  ;;  %v1249_v20 = vmul.f32 %v2325_v35, %v1213_v38  ;;  %v2733_v3 = vld [vmem:[%s2915_s3] ss:$0 sm:$0xff] }
 0x26d   : > { %1477 = vst [vmem:[%s2649_s19 + $0x18] sm:$0xff] %v1388_v50  ;;  %v1301_v59 = vadd.f32 %v2340_v36, %v1265_v44 }
 0x26e   : > { %v990_v57 = vmul.f32 %v1756_v60, %v989_v19  ;;  %v1285_v17 = vadd.f32 %v2340_v36, %v1249_v20 }
 0x26f   : > { %v1333_v52 = vmax.f32 %v1301_v59, 0.0 }
 0x270   : > { %v1317_v25 = vmax.f32 %v1285_v17, 0.0  ;;  %v994_v39 = vsel %vm993_vm15, %v1756_v60, %v990_v57 }
 0x271   : > { %1449 = vmatmul.f32.gmra.mxu2 %v1333_v52  ;;  %v1215_v29 = vmul.f32 %v994_v39, %v2399_v32 }
 0x272   : > { %1401 = vmatmul.f32.gmra.mxu1 %v1317_v25 }
 0x273   : > { %v1251_v54 = vmul.f32 %v2325_v35, %v1215_v29 }
 0x275   : > { %v1287_v14 = vadd.f32 %v2340_v36, %v1251_v54 }
 0x277   : > { %v1319_v53 = vmax.f32 %v1287_v14, 0.0 }
 0x27a   : > { %1404 = vmatmul.f32.gmra.mxu1 %v1318_v23 }
 0x282   : > { %1407 = vmatmul.f32.gmra.mxu1 %v1319_v53 }
 0x297   : > { %v808_v42 = vpop.xlane.xlu1 %807 }
 0x298   : > { %v846_v46 = vmul.f32 0.010416667, %v808_v42 }
 0x29a   : > { %v878_v63 = vadd.f32 1e-05, %v846_v46 }
 0x29c   : > { %1757 = vrsqrt.f32 %v878_v63  ;;  %vm1141_vm1 = vweird.f32 %v878_v63 }
 0x29e   : > { %v810_v37 = vpop.xlane.xlu0 %809  ;;  %v812_v51 = vpop.xlane.xlu2 %811 }
 0x29f   : > { %v847_v7 = vmul.f32 0.010416667, %v810_v37  ;;  %v848_v8 = vmul.f32 0.010416667, %v812_v51 }
 0x2a1   : > { %v879_v26 = vadd.f32 1e-05, %v847_v7  ;;  %v880_v32 = vadd.f32 1e-05, %v848_v8 }
 0x2a2   : > { %v1758_v56 = vpop.eup %1757 }
 0x2a3   : > { %v1136_v4 = vmul.f32 %v1758_v56, %v878_v63  ;;  %1759 = vrsqrt.f32 %v879_v26  ;;  %vm1142_vm0 = vweird.f32 %v1758_v56  ;;  %vm1151_vm5 = vweird.f32 %v879_v26 }
 0x2a4   : > { %1761 = vrsqrt.f32 %v880_v32  ;;  %vm1143_vm2 = vmor %vm1141_vm1, %vm1142_vm0  ;;  %vm1161_vm6 = vweird.f32 %v880_v32 }
 0x2a5   : > { %v1137_v31 = vmul.f32 %v1758_v56, %v1136_v4 }
 0x2a7   : > { %v1138_v35 = vmul.f32 0.5, %v1137_v31  ;;  %v780_v45 = vpop.xlane.xlu1 %779 }
 0x2a8   : > { %v832_v24 = vmul.f32 0.010416667, %v780_v45 }
 0x2a9   : > { %v1139_v36 = vsub.f32 1.5, %v1138_v35  ;;  %v1760_v41 = vpop.eup %1759 }
 0x2aa   : > { %v1762_v60 = vpop.eup %1761  ;;  %v1146_v30 = vmul.f32 %v1760_v41, %v879_v26  ;;  %v864_v47 = vadd.f32 1e-05, %v832_v24  ;;  %vm1152_vm3 = vweird.f32 %v1760_v41 }
 0x2ab   : > { %v1140_v5 = vmul.f32 %v1758_v56, %v1139_v36  ;;  %v1156_v10 = vmul.f32 %v1762_v60, %v880_v32  ;;  %vm1162_vm4 = vweird.f32 %v1762_v60  ;;  %vm1153_vm7 = vmor %vm1151_vm5, %vm1152_vm3 }
 0x2ac   : > { %v1147_v34 = vmul.f32 %v1760_v41, %v1146_v30  ;;  %1763 = vrsqrt.f32 %v864_v47  ;;  %v1423_v11 = vpop.f32.mrf.mxu2  ;;  %vm2745_vm8 = vmor %vm1161_vm6, %vm1162_vm4  ;;  %vm1001_vm10 = vweird.f32 %v864_v47 }
 0x2ad   : > { %v1144_v28 = vsel %vm1143_vm2, %v1758_v56, %v1140_v5  ;;  %v1157_v2 = vmul.f32 %v1762_v60, %v1156_v10  ;;  %v1424_v1 = vadd.f32 %v2629_v27, %v1423_v11 }
 0x2ae   : > { %v1230_v15 = vmul.f32 %v1144_v28, %v2426_v33  ;;  %v1148_v40 = vmul.f32 0.5, %v1147_v34  ;;  %v782_v49 = vpop.xlane.xlu0 %781  ;;  %v2740_v33 = vld [vmem:[%s2916_s4] ss:$0 sm:$0xff] }
 0x2af   : > { %v1158_v43 = vmul.f32 0.5, %v1157_v2  ;;  %1489 = vst [vmem:[%s2649_s19 + $0x78] sm:$0xff] %v1424_v1  ;;  %v833_v50 = vmul.f32 0.010416667, %v782_v49 }
 0x2b0   : > { %v1266_v16 = vmul.f32 %v2733_v3, %v1230_v15  ;;  %v1149_v38 = vsub.f32 1.5, %v1148_v40 }
 0x2b1   : > { %v1159_v44 = vsub.f32 1.5, %v1158_v43  ;;  %v2743_v59 = vadd.f32 1e-05, %v833_v50 }
 0x2b2   : > { %v1302_v19 = vadd.f32 %v2740_v33, %v1266_v16  ;;  %v1764_v20 = vpop.eup %1763  ;;  %v1150_v18 = vmul.f32 %v1760_v41, %v1149_v38 }
 0x2b3   : > { %v1160_v57 = vmul.f32 %v1762_v60, %v1159_v44  ;;  %v996_v17 = vmul.f32 %v1764_v20, %v864_v47  ;;  %1765 = vrsqrt.f32 %v2743_v59  ;;  %vm1002_vm9 = vweird.f32 %v1764_v20 }
 0x2b4   : > { %v1334_v52 = vmax.f32 %v1302_v19, 0.0  ;;  %v1154_v21 = vsel %vm1153_vm7, %v1760_v41, %v1150_v18  ;;  %v1426_v48 = vpop.f32.mrf.mxu2  ;;  %vm1003_vm11 = vmor %vm1001_vm10, %vm1002_vm9  ;;  %vm1011_vm13 = vweird.f32 %v2743_v59 }
 0x2b5   : > { %v997_v39 = vmul.f32 %v1764_v20, %v996_v17  ;;  %v1231_v29 = vmul.f32 %v1154_v21, %v2450_v13  ;;  %v1164_v23 = vsel %vm2745_vm8, %v1762_v60, %v1160_v57  ;;  %v1427_v54 = vadd.f32 %v2629_v27, %v1426_v48 }
 0x2b6   : > { %1452 = vmatmul.f32.gmra.mxu2 %v1334_v52  ;;  %v818_v53 = vpop.xlane.xlu2 %817  ;;  %v1232_v51 = vmul.f32 %v1164_v23, %v2453_v62 }
 0x2b7   : > { %v814_v14 = vpop.xlane.xlu1 %813  ;;  %v998_v42 = vmul.f32 0.5, %v997_v39  ;;  %v851_v63 = vmul.f32 0.010416667, %v818_v53  ;;  %v1267_v37 = vmul.f32 %v2733_v3, %v1231_v29  ;;  %1490 = vst [vmem:[%s2649_s19 + $0x80] sm:$0xff] %v1427_v54 }
 0x2b8   : > { %v849_v46 = vmul.f32 0.010416667, %v814_v14  ;;  %v1268_v62 = vmul.f32 %v2733_v3, %v1232_v51 }
 0x2b9   : > { %v999_v7 = vsub.f32 1.5, %v998_v42  ;;  %v2759_v13 = vadd.f32 1e-05, %v851_v63  ;;  %v1303_v56 = vadd.f32 %v2740_v33, %v1267_v37  ;;  %v1766_v26 = vpop.eup %1765 }
 0x2ba   : > { %v2757_v8 = vadd.f32 1e-05, %v849_v46  ;;  %v1006_v32 = vmul.f32 %v1766_v26, %v2743_v59  ;;  %v1304_v11 = vadd.f32 %v2740_v33, %v1268_v62  ;;  %vm1012_vm12 = vweird.f32 %v1766_v26 }
 0x2bb   : > { %v1000_v4 = vmul.f32 %v1764_v20, %v999_v7  ;;  %v1335_v31 = vmax.f32 %v1303_v56, 0.0  ;;  %vm1013_vm14 = vmor %vm1011_vm13, %vm1012_vm12  ;;  %vm1191_vm3 = vweird.f32 %v2759_v13 }
 0x2bc   : > { %1767 = vrsqrt.f32 %v2757_v8  ;;  %v1007_v35 = vmul.f32 %v1766_v26, %v1006_v32  ;;  %v1429_v45 = vpop.f32.mrf.mxu2  ;;  %v1336_v19 = vmax.f32 %v1304_v11, 0.0  ;;  %vm1171_vm1 = vweird.f32 %v2757_v8 }
 0x2bd   : > { %1769 = vrsqrt.f32 %v2759_v13  ;;  %v1004_v36 = vsel %vm1003_vm11, %v1764_v20, %v1000_v4  ;;  %v1430_v24 = vadd.f32 %v2629_v27, %v1429_v45 }
 0x2be   : > { %1455 = vmatmul.f32.gmra.mxu2 %v1335_v31  ;;  %v1216_v5 = vmul.f32 %v1004_v36, %v2490_v58  ;;  %v1008_v30 = vmul.f32 0.5, %v1007_v35 }
 0x2bf   : > { %v816_v41 = vpop.xlane.xlu1 %815  ;;  %v784_v60 = vpop.xlane.xlu0 %783  ;;  %1491 = vst [vmem:[%s2649_s19 + $0x88] sm:$0xff] %v1430_v24 }
 0x2c0   : > { %v1390_v47 = vpop.f32.mrf.mxu1  ;;  %v850_v10 = vmul.f32 0.010416667, %v816_v41  ;;  %v834_v34 = vmul.f32 0.010416667, %v784_v60  ;;  %v1252_v2 = vmul.f32 %v2733_v3, %v1216_v5  ;;  %v1009_v40 = vsub.f32 1.5, %v1008_v30 }
 0x2c1   : > { %v1391_v28 = vadd.f32 %v2629_v27, %v1390_v47 }
 0x2c2   : > { %v2772_v15 = vpop.eup %1767  ;;  %v2774_v1 = vadd.f32 1e-05, %v850_v10  ;;  %v2776_v43 = vadd.f32 1e-05, %v834_v34  ;;  %v1288_v16 = vadd.f32 %v2740_v33, %v1252_v2  ;;  %v1010_v38 = vmul.f32 %v1766_v26, %v1009_v40 }
 0x2c3   : > { %v1770_v58 = vpop.eup %1769  ;;  %v1166_v49 = vmul.f32 %v2772_v15, %v2757_v8  ;;  %1478 = vst [vmem:[%s2649_s19 + $0x20] sm:$0xff] %v1391_v28  ;;  %vm1172_vm15 = vweird.f32 %v2772_v15 }
 0x2c4   : > { %v1186_v50 = vmul.f32 %v1770_v58, %v2759_v13  ;;  %1771 = vrsqrt.f32 %v2774_v1  ;;  %v1432_v18 = vpop.f32.mrf.mxu2  ;;  %v1320_v57 = vmax.f32 %v1288_v16, 0.0  ;;  %v1014_v17 = vsel %vm1013_vm14, %v1766_v26, %v1010_v38  ;;  %vm1173_vm2 = vmor %vm1171_vm1, %vm1172_vm15 }
 0x2c5   : > { %v1167_v44 = vmul.f32 %v2772_v15, %v1166_v49  ;;  %1773 = vrsqrt.f32 %v2776_v43  ;;  %v1433_v25 = vadd.f32 %v2629_v27, %v1432_v18  ;;  %v1217_v39 = vmul.f32 %v1014_v17, %v2510_v22 }
 0x2c6   : > { %v1187_v20 = vmul.f32 %v1770_v58, %v1186_v50  ;;  %1458 = vmatmul.f32.gmra.mxu2 %v1336_v19  ;;  %1410 = vmatmul.f32.gmra.mxu1 %v1320_v57  ;;  %vm1192_vm0 = vweird.f32 %v1770_v58  ;;  %vm1181_vm7 = vweird.f32 %v2774_v1  ;;  %vm1021_vm9 = vweird.f32 %v2776_v43 }
 0x2c7   : > { %v1168_v52 = vmul.f32 0.5, %v1167_v44  ;;  %v820_v59 = vpop.xlane.xlu2 %819  ;;  %v786_v21 = vpop.xlane.xlu0 %785  ;;  %1492 = vst [vmem:[%s2649_s19 + $0x90] sm:$0xff] %v1433_v25  ;;  %v1253_v42 = vmul.f32 %v2733_v3, %v1217_v39  ;;  %vm1193_vm4 = vmor %vm1191_vm3, %vm1192_vm0 }
 0x2c8   : > { %v1188_v48 = vmul.f32 0.5, %v1187_v20  ;;  %v1393_v29 = vpop.f32.mrf.mxu1  ;;  %v852_v23 = vmul.f32 0.010416667, %v820_v59  ;;  %v835_v54 = vmul.f32 0.010416667, %v786_v21 }
 0x2c9   : > { %v1169_v14 = vsub.f32 1.5, %v1168_v52  ;;  %v1394_v53 = vadd.f32 %v2629_v27, %v1393_v29  ;;  %v1289_v26 = vadd.f32 %v2740_v33, %v1253_v42 }
 0x2ca   : > { %v1772_v46 = vpop.eup %1771  ;;  %v1189_v63 = vsub.f32 1.5, %v1188_v48  ;;  %v2793_v37 = vadd.f32 1e-05, %v852_v23  ;;  %v2795_v22 = vadd.f32 1e-05, %v835_v54 }
 0x2cb   : > { %v1774_v51 = vpop.eup %1773  ;;  %v1170_v7 = vmul.f32 %v2772_v15, %v1169_v14  ;;  %v1176_v56 = vmul.f32 %v1772_v46, %v2774_v1  ;;  %1479 = vst [vmem:[%s2649_s19 + $0x28] sm:$0xff] %v1394_v53  ;;  %v1321_v45 = vmax.f32 %v1289_v26, 0.0  ;;  %vm1182_vm5 = vweird.f32 %v1772_v46 }
 0x2cc   : > { %v1190_v4 = vmul.f32 %v1770_v58, %v1189_v63  ;;  %v1016_v32 = vmul.f32 %v1774_v51, %v2776_v43  ;;  %1775 = vrsqrt.f32 %v2793_v37  ;;  %v1435_v35 = vpop.f32.mrf.mxu2  ;;  %vm1022_vm6 = vweird.f32 %v1774_v51  ;;  %vm1183_vm8 = vmor %vm1181_vm7, %vm1182_vm5 }
 0x2cd   : > { %v1177_v31 = vmul.f32 %v1772_v46, %v1176_v56  ;;  %1777 = vrsqrt.f32 %v2795_v22  ;;  %v1174_v36 = vsel %vm1173_vm2, %v2772_v15, %v1170_v7  ;;  %v1436_v41 = vadd.f32 %v2629_v27, %v1435_v35  ;;  %vm1023_vm10 = vmor %vm1021_vm9, %vm1022_vm6 }
 0x2ce   : > { %v1194_v8 = vsel %vm1193_vm4, %v1770_v58, %v1190_v4  ;;  %v1017_v62 = vmul.f32 %v1774_v51, %v1016_v32  ;;  %v1233_v13 = vmul.f32 %v1174_v36, %v2575_v9  ;;  %1413 = vmatmul.f32.gmra.mxu1 %v1321_v45  ;;  %vm1201_vm13 = vweird.f32 %v2793_v37 }
 0x2cf   : > { %v1178_v24 = vmul.f32 0.5, %v1177_v31  ;;  %v1235_v60 = vmul.f32 %v1194_v8, %v2563_v12  ;;  %1493 = vst [vmem:[%s2649_s19 + $0x98] sm:$0xff] %v1436_v41  ;;  %vm1031_vm15 = vweird.f32 %v2795_v22 }
 0x2d0   : > { %v1018_v5 = vmul.f32 0.5, %v1017_v62  ;;  %v1396_v30 = vpop.f32.mrf.mxu1  ;;  %v1269_v34 = vmul.f32 %v2733_v3, %v1233_v13 }
 0x2d1   : > { %v1179_v47 = vsub.f32 1.5, %v1178_v24  ;;  %v1397_v10 = vadd.f32 %v2629_v27, %v1396_v30  ;;  %v1271_v28 = vmul.f32 %v2733_v3, %v1235_v60 }
 0x2d2   : > { %v1776_v2 = vpop.eup %1775  ;;  %v1019_v11 = vsub.f32 1.5, %v1018_v5  ;;  %v1305_v40 = vadd.f32 %v2740_v33, %v1269_v34 }
 0x2d3   : > { %v1778_v15 = vpop.eup %1777  ;;  %v1180_v9 = vmul.f32 %v1772_v46, %v1179_v47  ;;  %v1196_v12 = vmul.f32 %v1776_v2, %v2793_v37  ;;  %1480 = vst [vmem:[%s2649_s19 + $0x30] sm:$0xff] %v1397_v10  ;;  %v1307_v16 = vadd.f32 %v2740_v33, %v1271_v28  ;;  %vm1202_vm11 = vweird.f32 %v1776_v2 }
 0x2d4   : > { %v1020_v58 = vmul.f32 %v1774_v51, %v1019_v11  ;;  %v1026_v49 = vmul.f32 %v1778_v15, %v2795_v22  ;;  %v1337_v50 = vmax.f32 %v1305_v40, 0.0  ;;  %v1438_v19 = vpop.f32.mrf.mxu2  ;;  %vm1032_vm12 = vweird.f32 %v1778_v15  ;;  %vm1203_vm14 = vmor %vm1201_vm13, %vm1202_vm11 }
 0x2d5   : > { %v1197_v38 = vmul.f32 %v1776_v2, %v1196_v12  ;;  %v1184_v44 = vsel %vm1183_vm8, %v1772_v46, %v1180_v9  ;;  %v1339_v20 = vmax.f32 %v1307_v16, 0.0  ;;  %v1439_v52 = vadd.f32 %v2629_v27, %v1438_v19  ;;  %vm1033_vm0 = vmor %vm1031_vm15, %vm1032_vm12 }
 0x2d6   : > { %v1027_v1 = vmul.f32 %v1778_v15, %v1026_v49  ;;  %v1024_v18 = vsel %vm1023_vm10, %v1774_v51, %v1020_v58  ;;  %v1234_v57 = vmul.f32 %v1184_v44, %v2601_v55  ;;  %1461 = vmatmul.f32.gmra.mxu2 %v1337_v50 }
 0x2d7   : > { %v1198_v17 = vmul.f32 0.5, %v1197_v38  ;;  %v1218_v43 = vmul.f32 %v1024_v18, %v2616_v0  ;;  %1467 = vmatmul.f32.vlgmr.msrb.gmra.mxu3 %v1339_v20  ;;  %1494 = vst [vmem:[%s2649_s19 + $0xa0] sm:$0xff] %v1439_v52 }
 0x2d8   : > { %v1028_v25 = vmul.f32 0.5, %v1027_v1  ;;  %v1270_v59 = vmul.f32 %v2733_v3, %v1234_v57 }
 0x2d9   : > { %v1199_v21 = vsub.f32 1.5, %v1198_v17  ;;  %v1254_v39 = vmul.f32 %v2733_v3, %v1218_v43 }
 0x2da   : > { %v1029_v48 = vsub.f32 1.5, %v1028_v25  ;;  %v1306_v29 = vadd.f32 %v2740_v33, %v1270_v59 }
 0x2db   : > { %v1200_v55 = vmul.f32 %v1776_v2, %v1199_v21  ;;  %v1290_v23 = vadd.f32 %v2740_v33, %v1254_v39 }
 0x2dc   : > { %v1030_v0 = vmul.f32 %v1778_v15, %v1029_v48  ;;  %v1338_v54 = vmax.f32 %v1306_v29, 0.0  ;;  %v1441_v42 = vpop.f32.mrf.mxu2 }
 0x2dd   : > { %v1322_v14 = vmax.f32 %v1290_v23, 0.0  ;;  %v1204_v53 = vsel %vm1203_vm14, %v1776_v2, %v1200_v55  ;;  %v1442_v51 = vadd.f32 %v2629_v27, %v1441_v42 }
 0x2de   : > { %v1034_v46 = vsel %vm1033_vm0, %v1778_v15, %v1030_v0  ;;  %v1236_v63 = vmul.f32 %v1204_v53, %v2658_v61  ;;  %1464 = vmatmul.f32.gmra.mxu2 %v1338_v54  ;;  %v1399_v37 = vpop.f32.mrf.mxu1 }
 0x2df   : > { %1416 = vmatmul.f32.gmra.mxu1 %v1322_v14  ;;  %v1219_v7 = vmul.f32 %v1034_v46, %v2640_v6  ;;  %v1400_v56 = vadd.f32 %v2629_v27, %v1399_v37  ;;  %1495 = vst [vmem:[%s2649_s19 + $0xa8] sm:$0xff] %v1442_v51 }
 0x2e0   : > { %v1272_v22 = vmul.f32 %v2733_v3, %v1236_v63 }
 0x2e1   : > { %v1255_v26 = vmul.f32 %v2733_v3, %v1219_v7  ;;  %1481 = vst [vmem:[%s2649_s19 + $0x38] sm:$0xff] %v1400_v56 }
 0x2e2   : > { %v1308_v61 = vadd.f32 %v2740_v33, %v1272_v22 }
 0x2e3   : > { %v1291_v4 = vadd.f32 %v2740_v33, %v1255_v26 }
 0x2e4   : > { %v1340_v32 = vmax.f32 %v1308_v61, 0.0  ;;  %v1444_v8 = vpop.f32.mrf.mxu2 }
 0x2e5   : > { %v1323_v31 = vmax.f32 %v1291_v4, 0.0  ;;  %v1445_v6 = vadd.f32 %v2629_v27, %v1444_v8 }
 0x2e6   : > { %1470 = vmatmul.f32.gmra.mxu3 %v1340_v32 }
 0x2e7   : > { %1419 = vmatmul.f32.gmra.mxu1 %v1323_v31  ;;  %1496 = vst [vmem:[%s2649_s19 + $0xb0] sm:$0xff] %v1445_v6 }
 0x2ec   : > { %v1447_v62 = vpop.f32.mrf.mxu2 }
 0x2ed   : > { %v1448_v3 = vadd.f32 %v2629_v27, %v1447_v62 }
 0x2ef   : > { %v1402_v35 = vpop.f32.mrf.mxu1  ;;  %1497 = vst [vmem:[%s2649_s19 + $0xb8] sm:$0xff] %v1448_v3 }
 0x2f0   : > { %v1403_v45 = vadd.f32 %v2629_v27, %v1402_v35 }
 0x2f2   : > { %1482 = vst [vmem:[%s2649_s19 + $0x40] sm:$0xff] %v1403_v45 }
 0x2f4   : > { %v1450_v33 = vpop.f32.mrf.mxu2 }
 0x2f5   : > { %v1451_v36 = vadd.f32 %v2629_v27, %v1450_v33 }
 0x2f7   : > { %v1405_v24 = vpop.f32.mrf.mxu1  ;;  %1498 = vst [vmem:[%s2649_s19 + $0xc0] sm:$0xff] %v1451_v36 }
 0x2f8   : > { %v1406_v41 = vadd.f32 %v2629_v27, %v1405_v24 }
 0x2fa   : > { %1483 = vst [vmem:[%s2649_s19 + $0x48] sm:$0xff] %v1406_v41 }
 0x2ff   : > { %v1408_v13 = vpop.f32.mrf.mxu1 }
 0x300   : > { %v1409_v60 = vadd.f32 %v2629_v27, %v1408_v13 }
 0x302   : > { %1484 = vst [vmem:[%s2649_s19 + $0x50] sm:$0xff] %v1409_v60 }
 0x339   : > { %v1453_v5 = vpop.f32.mrf.mxu2 }
 0x33a   : > { %v1454_v30 = vadd.f32 %v2629_v27, %v1453_v5 }
 0x33c   : > { %1499 = vst [vmem:[%s2649_s19 + $0xc8] sm:$0xff] %v1454_v30 }
 0x341   : > { %v1456_v47 = vpop.f32.mrf.mxu2 }
 0x342   : > { %v1457_v10 = vadd.f32 %v2629_v27, %v1456_v47 }
 0x343   : > { %v1411_v34 = vpop.f32.mrf.mxu1 }
 0x344   : > { %1500 = vst [vmem:[%s2649_s19 + $0xd0] sm:$0xff] %v1457_v10  ;;  %v1412_v28 = vadd.f32 %v2629_v27, %v1411_v34 }
 0x346   : > { %1485 = vst [vmem:[%s2649_s19 + $0x58] sm:$0xff] %v1412_v28 }
 0x349   : > { %v1459_v2 = vpop.f32.mrf.mxu2 }
 0x34a   : > { %v1460_v11 = vadd.f32 %v2629_v27, %v1459_v2 }
 0x34b   : > { %v1414_v15 = vpop.f32.mrf.mxu1 }
 0x34c   : > { %1501 = vst [vmem:[%s2649_s19 + $0xd8] sm:$0xff] %v1460_v11  ;;  %v1415_v9 = vadd.f32 %v2629_v27, %v1414_v15 }
 0x34e   : > { %1486 = vst [vmem:[%s2649_s19 + $0x60] sm:$0xff] %v1415_v9 }
 0x359   : > { %v1462_v12 = vpop.f32.mrf.mxu2 }
 0x35a   : > { %v1463_v40 = vadd.f32 %v2629_v27, %v1462_v12  ;;  %v1468_v58 = vpop.f32.mrf.mxu3 }
 0x35b   : > { %v1469_v49 = vadd.f32 %v2629_v27, %v1468_v58 }
 0x35c   : > { %v1417_v16 = vpop.f32.mrf.mxu1  ;;  %1502 = vst [vmem:[%s2649_s19 + $0xe0] sm:$0xff] %v1463_v40 }
 0x35d   : > { %v1418_v38 = vadd.f32 %v2629_v27, %v1417_v16  ;;  %1504 = vst [vmem:[%s2649_s19 + $0xf0] sm:$0xff] %v1469_v49 }
 0x35f   : > { %1487 = vst [vmem:[%s2649_s19 + $0x68] sm:$0xff] %v1418_v38 }
 0x361   : > { %v1465_v50 = vpop.f32.mrf.mxu2 }
 0x362   : > { %v1466_v44 = vadd.f32 %v2629_v27, %v1465_v50 }
 0x364   : > { %v1420_v1 = vpop.f32.mrf.mxu1  ;;  %1503 = vst [vmem:[%s2649_s19 + $0xe8] sm:$0xff] %v1466_v44 }
 0x365   : > { %v1421_v19 = vadd.f32 %v2629_v27, %v1420_v1 }
 0x367   : > { %1488 = vst [vmem:[%s2649_s19 + $0x70] sm:$0xff] %v1421_v19 }
 0x369   : > { %v1471_v20 = vpop.f32.mrf.mxu3 }
 0x36a   : > { %v1472_v18 = vadd.f32 %v2629_v27, %v1471_v20 }
 0x36c   : > { %1505 = vst [vmem:[%s2649_s19 + $0xf8] sm:$0xff] %v1472_v18 }
 0x36d   : > { %1809 = shalt.err (!%p1806_p3)
}
 0x36e   : > { %s1846_s26 = smov 128   ;;  %s1847_s19 = smov 8  }
 0x36f   : > { %1669 = dma.vmem_to_hbm [thread:$0]  (%p1931_p5), %s1520_s13, 4096, %s1522_s17, %s1507_s9, %s1846_s26, %s1846_s26, %s1847_s19  }
 0x370 PF: > { %p1675_p4 = scmp.ge.s32.totalorder %s1844_s30, 2  ;;  %s1536_s10 = sand.u32 1, %s1832_s27  }
 0x371   : > { %s1537_s12 = scalar_lea.sflag [#allocation3], %s1536_s10 }
 0x372   : > { %p1672_p7 = pnand %p1675_p4, %p1935_p6 }
 0x374   : > { %p1673_p8 = pneg %p1672_p7 }
 0x376   : > { %1827 = dma.done.wait (%p1673_p8), %s1537_s12, 4096  }
 0x377   : > { %1829 = vsyncadd (%p1673_p8), %s1537_s12, 4294963200  ;;  %p18_p9 = scmp.ge.s32.totalorder %s1918_s11, 4   ;;  %s2943_s27 = smov %s1836_s28 }
 0x378   : > { %s2944_s28 = smov %s1840_s29  ;;  %s2945_s29 = smov %s1929_s14 }
 0x379   : > { %s2946_s30 = smov %s1918_s11  ;;  %20 = sbr.rel (!%p18_p9) target bundleno = 3 (0x3), region = 87 }
 0x37e   :  { %1543 = vsyncpa [#allocation3], 1 }
 0x37f   :  { %1545 = vsyncpa [#allocation3 + $0x1], 1 }

</bundles_post_ra>
